<compile_context>
chip_gen: v6e
topology: v6e:2x2x1
jax: 0.10.0
libtpu: 0.0.40
codegen_flags: <defaults>
</compile_context>

<pallas_src>
import functools

import jax
import jax.numpy as jnp
from jax import lax
from jax.experimental import pallas as pl
from jax.experimental.pallas import tpu as pltpu


def _round_up(x, m):
    return ((x + m - 1) // m) * m


def _vmem_limit(needed_bytes):
    # v5e's scoped-VMEM default is only 16 MiB -> request explicitly; stay well
    # under the smallest physical VMEM per core (v7x: 64 MiB).
    return int(min(max(needed_bytes + (8 << 20), 32 << 20), 60 << 20))


def _default_batch_splits():
    """2 for chips exposing 2 TensorCores per Pallas device (v4/v5p megacore, v7x)."""
    try:
        kind = jax.devices()[0].device_kind.lower()
    except Exception:
        return 1
    if any(tag in kind for tag in ("v4", "v5p", "7x", "tpu7")):
        return 2
    return 1


def _pick_col_tile(n_cols):
    for cand in (512, 256, 128):
        if n_cols % cand == 0:
            return cand
    return n_cols  # < 128: block equals the full dim (allowed)


def _pick_row_tile(m, row_mult, cap=1024):
    """Largest sensible row tile: big tm cuts W re-streams, but avoid large row padding."""
    m = _round_up(m, row_mult)
    if m <= cap:
        return m
    best_tm, best_score = row_mult, float("inf")
    for tm in range(cap, row_mult - 1, -row_mult):
        mp = _round_up(m, tm)
        score = mp * (1.0 + 256.0 / tm)   # padded-row compute + W re-stream weight
        if score < best_score:
            best_tm, best_score = tm, score
    return best_tm


def _pick_time_block(T, cap):
    """Time-chunk size: amortize per-grid-step overhead without padding many steps."""
    best_tb, best_score = 1, float("inf")
    for tb in range(max(1, min(cap, T)), 0, -1):
        tp = _round_up(T, tb)
        score = tp + 2.0 * (tp / tb)
        if score < best_score:
            best_tb, best_score = tb, score
    return best_tb


# -----------------------------------------------------------------------------
# Shared Pallas kernel: tiled  out = x @ w + b   (used for input & vocab projection)
# -----------------------------------------------------------------------------
def _matmul_bias_kernel(x_ref, w_ref, b_ref, o_ref):
    o_ref[...] = (jnp.dot(x_ref[...], w_ref[...],
                          preferred_element_type=jnp.float32)
                  + b_ref[...].astype(jnp.float32)).astype(o_ref.dtype)


def _matmul_bias_pallas(x, w, b, out_dtype=jnp.float32, tm_cap=1024):
    """x: (M, K); w: (K, Nc); b: (1, Nc) -> (M, Nc) in out_dtype."""
    M, K = x.shape
    Nc = w.shape[1]
    row_mult = 16 if x.dtype == jnp.bfloat16 else 8
    tm = _pick_row_tile(M, row_mult, tm_cap)
    Mp = _round_up(M, tm)
    if Mp != M:
        x = jnp.pad(x, ((0, Mp - M), (0, 0)))
    tn = _pick_col_tile(Nc)

    needed = 2 * (tm * K * x.dtype.itemsize
                  + K * tn * w.dtype.itemsize
                  + tn * b.dtype.itemsize
                  + tm * tn * jnp.dtype(out_dtype).itemsize)

    out = pl.pallas_call(
        _matmul_bias_kernel,
        out_shape=jax.ShapeDtypeStruct((Mp, Nc), out_dtype),
        grid_spec=pltpu.PrefetchScalarGridSpec(
            num_scalar_prefetch=0,
            grid=(Mp // tm, Nc // tn),
            in_specs=[
                pl.BlockSpec((tm, K), lambda i, j: (i, 0)),
                pl.BlockSpec((K, tn), lambda i, j: (0, j)),
                pl.BlockSpec((1, tn), lambda i, j: (0, j)),
            ],
            out_specs=pl.BlockSpec((tm, tn), lambda i, j: (i, j)),
        ),
        compiler_params=pltpu.CompilerParams(
            dimension_semantics=("parallel", "parallel"),
            vmem_limit_bytes=_vmem_limit(needed),
        ),
    )(x, w, b)
    return out[:M] if Mp != M else out


# -----------------------------------------------------------------------------
# Pallas kernel: LSTM recurrence; grid = (batch_splits, Tp // TB)
# -----------------------------------------------------------------------------
def _lstm_recurrence_kernel(gin_ref, h0_ref, whh_ref, hout_ref, h_sc, c_sc):
    # A new batch block starts at its first time chunk: reload h0, zero c.
    @pl.when(pl.program_id(1) == 0)
    def _():
        h_sc[...] = h0_ref[...].astype(jnp.float32)
        c_sc[...] = jnp.zeros_like(c_sc)

    Hp = h_sc.shape[-1]
    TB = gin_ref.shape[0]

    def step(t, carry):
        h_prev = h_sc[...]
        c_prev = c_sc[...]
        # Only the genuinely recurrent matmul remains. W_hh is read from its
        # single-buffered whole-array VMEM ref inside the dot so it streams
        # VMEM -> MXU instead of being materialized in vregs each step.
        gates = gin_ref[t].astype(jnp.float32) + jnp.dot(
            h_prev.astype(whh_ref.dtype), whh_ref[...],
            preferred_element_type=jnp.float32)            # (Nb, 4Hp), order i,f,g,o

        i_g = jax.nn.sigmoid(gates[:, 0 * Hp:1 * Hp])
        f_g = jax.nn.sigmoid(gates[:, 1 * Hp:2 * Hp])
        g_g = jnp.tanh(gates[:, 2 * Hp:3 * Hp])
        o_g = jax.nn.sigmoid(gates[:, 3 * Hp:4 * Hp])

        c_new = f_g * c_prev + i_g * g_g
        h_new = o_g * jnp.tanh(c_new)
        c_sc[...] = c_new
        h_sc[...] = h_new
        hout_ref[t] = h_new.astype(hout_ref.dtype)
        return carry

    lax.fori_loop(0, TB, step, 0, unroll=True)


def _lstm_recurrence_pallas(gates_in, h0, w_hh, time_block, batch_splits, out_dtype):
    """gates_in: (Tp, Np, 4Hp) f32 time-major; h0: (Np, Hp) f32; w_hh: (Hp, 4Hp).
    Returns hidden states (Tp, Np, Hp) in out_dtype."""
    Tp, Np, G = gates_in.shape
    Hp = h0.shape[1]
    Nb = Np // batch_splits

    needed = (2 * time_block * Nb * G * gates_in.dtype.itemsize   # gin blocks (x2 buf)
              + 2 * time_block * Nb * Hp * jnp.dtype(out_dtype).itemsize
              + 2 * Nb * Hp * h0.dtype.itemsize
              + Hp * G * w_hh.dtype.itemsize                      # W_hh single copy
              + 2 * Nb * Hp * 4)                                  # h/c scratch

    return pl.pallas_call(
        _lstm_recurrence_kernel,
        out_shape=jax.ShapeDtypeStruct((Tp, Np, Hp), out_dtype),
        grid_spec=pltpu.PrefetchScalarGridSpec(
            num_scalar_prefetch=0,
            grid=(batch_splits, Tp // time_block),
            in_specs=[
                pl.BlockSpec((time_block, Nb, G), lambda b, tc: (tc, b, 0)),  # gates_in
                pl.BlockSpec((Nb, Hp), lambda b, tc: (b, 0)),                 # h0
                pl.BlockSpec(memory_space=pltpu.MemorySpace.VMEM),            # W_hh, whole,
            ],                                                                # single-buffered
            out_specs=pl.BlockSpec((time_block, Nb, Hp), lambda b, tc: (tc, b, 0)),
            scratch_shapes=[
                pltpu.VMEM((Nb, Hp), jnp.float32),   # h state (carried across time chunks)
                pltpu.VMEM((Nb, Hp), jnp.float32),   # c state
            ],
        ),
        compiler_params=pltpu.CompilerParams(
            # batch axis parallel (2 TCs on megacore/v7x), time axis sequential.
            dimension_semantics=("parallel", "arbitrary"),
            vmem_limit_bytes=_vmem_limit(needed),
        ),
    )(gates_in, h0, w_hh)


# -----------------------------------------------------------------------------
# Wrapper: GenerativeDecoder.forward (training branch)
# -----------------------------------------------------------------------------
def generative_decoder_forward(encoder_output, ans_in, params, config,
                               compute_dtype=jnp.bfloat16, time_block=16,
                               batch_splits=None):
    """encoder_output: (B, R, H) f32; ans_in: (B, R, T) int32.

    Returns ans_word_scores: (B*R, T, vocab_size) f32.
    compute_dtype=bfloat16 (default) puts matmul operands in bf16 (MXU peak on
    v6e/v7x) while keeping h/c state, gate math and accumulation in f32.
    """
    B, R, T = ans_in.shape
    N = B * R
    H = config["lstm_hidden_size"]
    E = params["embedding"].shape[-1]
    V = params["w_out"].shape[-1]

    if batch_splits is None:
        batch_splits = max(1, _default_batch_splits())

    # Hardware-friendly padded sizes (16-row alignment for packed bf16 tiles).
    row_align = 16 if compute_dtype == jnp.bfloat16 else 8
    Np = _round_up(N, row_align * batch_splits)
    Hp = _round_up(H, 128)
    Vp = _round_up(V, 128)
    TB = _pick_time_block(T, time_block)
    Tp = _round_up(T, TB)

    # Embedding gather, directly in time-major order (no extra XLA transpose of
    # the embedded activations). Padding rows of the embedding table are zero.
    tok_tm = jnp.swapaxes(ans_in.reshape(N, T), 0, 1)                   # (T, N)
    x_tm = jnp.take(params["embedding"], tok_tm, axis=0)                # (T, N, E)
    x_tm = jnp.pad(x_tm, ((0, Tp - T), (0, Np - N), (0, 0))).astype(compute_dtype)

    # Pad LSTM weights per gate block (PyTorch gate order i, f, g, o), H -> Hp.
    # NOTE: zero-padded gate columns keep the padded h/c lanes exactly 0 only
    # because init_cell == 0 and the padded columns of h0 / x are 0
    # (i=f=o=sigmoid(0)=0.5, g=tanh(0)=0 -> c_pad stays 0, h_pad stays 0).
    # Revisit if a nonzero c0 or multi-layer chaining is ever added.
    def pad_gates(w2d, row_pad):
        rows = w2d.shape[0]
        w4 = w2d.reshape(rows, 4, H)
        w4 = jnp.pad(w4, ((0, row_pad), (0, 0), (0, Hp - H)))
        return w4.reshape(rows + row_pad, 4 * Hp)

    w_ih = pad_gates(params["w_ih"], 0).astype(compute_dtype)           # (E, 4Hp)
    w_hh = pad_gates(params["w_hh"], Hp - H).astype(compute_dtype)      # (Hp, 4Hp)
    bias = pad_gates((params["b_ih"] + params["b_hh"]).reshape(1, -1),
                     0).astype(jnp.float32)                             # (1, 4Hp)

    # Kernel A: input projection for all timesteps as one big matmul.
    # gates_in kept in f32 so the recurrent path keeps full accumulation precision.
    gin = _matmul_bias_pallas(x_tm.reshape(Tp * Np, E), w_ih, bias,
                              out_dtype=jnp.float32)
    gin = gin.reshape(Tp, Np, 4 * Hp)

    # init_hidden = encoder_output.view(1, N, H); init_cell = 0 (1 LSTM layer).
    h0 = encoder_output.reshape(N, H).astype(jnp.float32)
    h0 = jnp.pad(h0, ((0, Np - N), (0, Hp - H)))                        # (Np, Hp)

    # Kernel B: sequential LSTM recurrence.
    h_out = _lstm_recurrence_pallas(gin, h0, w_hh, TB, batch_splits,
                                    out_dtype=compute_dtype)            # (Tp, Np, Hp)

    # Transpose the (cheap, ~V/H smaller than scores) hidden states to
    # batch-major and drop padding rows, so the vocab projection emits scores
    # directly in (N, T, V) order with no full-size score transpose afterwards.
    h_bm = jnp.swapaxes(h_out, 0, 1)[:N, :T].reshape(N * T, Hp)

    # Kernel C: vocab projection (dropout p=0.0 is identity).
    w_out = jnp.pad(params["w_out"], ((0, Hp - H), (0, Vp - V))).astype(compute_dtype)
    b_out = jnp.pad(params["b_out"], (0, Vp - V)).reshape(1, Vp).astype(jnp.float32)
    scores = _matmul_bias_pallas(h_bm, w_out, b_out, out_dtype=jnp.float32)  # (N*T, Vp)

    return scores.reshape(N, T, Vp)[:, :, :V]


# -----------------------------------------------------------------------------
# Pure-JAX reference (lax.scan LSTM) for verification
# -----------------------------------------------------------------------------
def reference_forward(encoder_output, ans_in, params, config):
    B, R, T = ans_in.shape
    N = B * R
    x = jnp.take(params["embedding"], ans_in.reshape(N, T), axis=0)
    h0 = encoder_output.reshape(N, -1).astype(jnp.float32)
    c0 = jnp.zeros_like(h0)
    H = h0.shape[-1]
    bias = params["b_ih"] + params["b_hh"]

    def step(carry, x_t):
        h, c = carry
        gates = x_t @ params["w_ih"] + h @ params["w_hh"] + bias
        i = jax.nn.sigmoid(gates[:, 0 * H:1 * H])
        f = jax.nn.sigmoid(gates[:, 1 * H:2 * H])
        g = jnp.tanh(gates[:, 2 * H:3 * H])
        o = jax.nn.sigmoid(gates[:, 3 * H:4 * H])
        c = f * c + i * g
        h = o * jnp.tanh(c)
        return (h, c), h

    (_, _), hs = lax.scan(step, (h0, c0), jnp.swapaxes(x, 0, 1))   # (T, N, H)
    hs = jnp.swapaxes(hs, 0, 1)                                    # (N, T, H)
    return hs @ params["w_out"] + params["b_out"]                  # (N, T, V)


# -----------------------------------------------------------------------------
# Deterministic parameter initialization (shapes from __init__)
# -----------------------------------------------------------------------------
def init_params(key, vocab_size, emb_size, hidden_size, pad_index):
    ks = jax.random.split(key, 7)
    s = 1.0 / jnp.sqrt(hidden_size)
    embedding = jax.random.normal(ks[0], (vocab_size, emb_size), jnp.float32) * 0.1
    embedding = embedding.at[pad_index].set(0.0)                  # padding_idx
    return {
        "embedding": embedding,
        # LSTM weights, transposed vs. PyTorch (weight_ih_l0 is (4H, E)).
        "w_ih": jax.random.uniform(ks[1], (emb_size, 4 * hidden_size), jnp.float32, -s, s),
        "w_hh": jax.random.uniform(ks[2], (hidden_size, 4 * hidden_size), jnp.float32, -s, s),
        "b_ih": jax.random.uniform(ks[3], (4 * hidden_size,), jnp.float32, -s, s),
        "b_hh": jax.random.uniform(ks[4], (4 * hidden_size,), jnp.float32, -s, s),
        # lstm_to_words Linear(H, V): PyTorch weight is (V, H) -> stored (H, V).
        "w_out": jax.random.uniform(ks[5], (hidden_size, vocab_size), jnp.float32, -s, s),
        "b_out": jax.random.uniform(ks[6], (vocab_size,), jnp.float32, -s, s),
    }


if __name__ == "__main__":
    config = {
        "beam_search": False,
        "word_embedding_size": 32,
        "lstm_hidden_size": 32,
        "lstm_num_layers": 1,
        "dropout": 0.0,
    }
    VOCAB_SIZE = 64
    PAD_INDEX = 0
    B, R, T = 2, 2, 8
    H = config["lstm_hidden_size"]
    E = config["word_embedding_size"]

    key = jax.random.PRNGKey(0)
    k_params, k_enc, k_tok = jax.random.split(key, 3)

    params = init_params(k_params, VOCAB_SIZE, E, H, PAD_INDEX)
    encoder_output = jax.random.normal(k_enc, (B, R, H), jnp.float32)
    ans_in = jax.random.randint(k_tok, (B, R, T), 0, VOCAB_SIZE, jnp.int32)

    ref = reference_forward(encoder_output, ans_in, params, config)

    # Full-precision path (tight check).
    fwd_f32 = jax.jit(functools.partial(generative_decoder_forward, config=config,
                                        compute_dtype=jnp.float32))
    scores_f32 = jax.block_until_ready(fwd_f32(encoder_output, ans_in, params))
    assert scores_f32.shape == (B * R, T, VOCAB_SIZE)
    assert jnp.allclose(scores_f32, ref, atol=1e-3, rtol=1e-3), "f32 mismatch vs reference"

    # Default bf16-operand path (MXU-peak mode on v6e/v7x) - loose check.
    fwd_bf16 = jax.jit(functools.partial(generative_decoder_forward, config=config,
                                         compute_dtype=jnp.bfloat16))
    scores_bf16 = jax.block_until_ready(fwd_bf16(encoder_output, ans_in, params))
    assert scores_bf16.shape == (B * R, T, VOCAB_SIZE)
    assert jnp.allclose(scores_bf16, ref, atol=5e-2, rtol=5e-2), "bf16 mismatch vs reference"

    print("KERNEL_OK")
</pallas_src>

<mosaic_0001>
module attributes {stable_mosaic.version = 11 : i64} {
  func.func @_matmul_bias_kernel(%arg0: i32, %arg1: i32, %arg2: memref<64x32xf32, #tpu.memory_space<vmem>>, %arg3: memref<32x512xf32, #tpu.memory_space<vmem>>, %arg4: memref<1x512xf32, #tpu.memory_space<vmem>>, %arg5: memref<64x512xf32, #tpu.memory_space<vmem>>) attributes {dimension_semantics = [#tpu.dimension_semantics<parallel>, #tpu.dimension_semantics<parallel>], iteration_bounds = array<i64: 1, 1>, scalar_prefetch = 0 : i64, scratch_operands = 0 : i64, tpu.core_type = #tpu.core_type<tc>, window_params = [{transform_indices = @transform_0, window_bounds = array<i64: 64, 32>}, {transform_indices = @transform_1, window_bounds = array<i64: 32, 512>}, {transform_indices = @transform_2, window_bounds = array<i64: 1, 512>}, {transform_indices = @transform_3, window_bounds = array<i64: 64, 512>}]} {
    %c0 = arith.constant 0 : index
    %c0_0 = arith.constant 0 : index
    %0 = vector.load %arg2[%c0, %c0_0] : memref<64x32xf32, #tpu.memory_space<vmem>>, vector<64x32xf32>
    %c0_1 = arith.constant 0 : index
    %c0_2 = arith.constant 0 : index
    %1 = vector.load %arg3[%c0_1, %c0_2] : memref<32x512xf32, #tpu.memory_space<vmem>>, vector<32x512xf32>
    %cst = arith.constant dense<0.000000e+00> : vector<64x512xf32>
    %2 = tpu.matmul %0, %1, %cst {dimension_numbers = #tpu.dot_dimension_numbers<[1], [0], [0], [1], [0, 0, 1, 1], [], []>} : vector<64x32xf32>, vector<32x512xf32>, vector<64x512xf32> -> vector<64x512xf32>
    %c0_3 = arith.constant 0 : index
    %c0_4 = arith.constant 0 : index
    %3 = vector.load %arg4[%c0_3, %c0_4] : memref<1x512xf32, #tpu.memory_space<vmem>>, vector<1x512xf32>
    %4 = vector.broadcast %3 : vector<1x512xf32> to vector<64x512xf32>
    %5 = arith.addf %2, %4 : vector<64x512xf32>
    %c0_5 = arith.constant 0 : index
    %c0_6 = arith.constant 0 : index
    %6 = vector.load %arg5[%c0_5, %c0_6] : memref<64x512xf32, #tpu.memory_space<vmem>>, vector<64x512xf32>
    tpu.vector_store %arg5[%c0_5, %c0_6], %5 {strides = array<i32>} : memref<64x512xf32, #tpu.memory_space<vmem>>, vector<64x512xf32>,
    return
  }
  func.func @transform_0(%arg0: i32, %arg1: i32) -> (i32, i32) {
    %c0_i32 = arith.constant 0 : i32
    %c0_i32_0 = arith.constant 0 : i32
    return %arg0, %c0_i32 : i32, i32
  }
  func.func @transform_1(%arg0: i32, %arg1: i32) -> (i32, i32) {
    %c0_i32 = arith.constant 0 : i32
    %c0_i32_0 = arith.constant 0 : i32
    return %c0_i32, %arg1 : i32, i32
  }
  func.func @transform_2(%arg0: i32, %arg1: i32) -> (i32, i32) {
    %c0_i32 = arith.constant 0 : i32
    %c0_i32_0 = arith.constant 0 : i32
    return %c0_i32, %arg1 : i32, i32
  }
  func.func @transform_3(%arg0: i32, %arg1: i32) -> (i32, i32) {
    %c0_i32 = arith.constant 0 : i32
    return %arg0, %arg1 : i32, i32
  }
}

module attributes {stable_mosaic.version = 11 : i64} {
  func.func @_matmul_bias_kernel(%arg0: i32, %arg1: i32, %arg2: memref<32x128xf32, #tpu.memory_space<vmem>>, %arg3: memref<128x128xf32, #tpu.memory_space<vmem>>, %arg4: memref<1x128xf32, #tpu.memory_space<vmem>>, %arg5: memref<32x128xf32, #tpu.memory_space<vmem>>) attributes {dimension_semantics = [#tpu.dimension_semantics<parallel>, #tpu.dimension_semantics<parallel>], iteration_bounds = array<i64: 1, 1>, scalar_prefetch = 0 : i64, scratch_operands = 0 : i64, tpu.core_type = #tpu.core_type<tc>, window_params = [{transform_indices = @transform_0, window_bounds = array<i64: 32, 128>}, {transform_indices = @transform_1, window_bounds = array<i64: 128, 128>}, {transform_indices = @transform_2, window_bounds = array<i64: 1, 128>}, {transform_indices = @transform_3, window_bounds = array<i64: 32, 128>}]} {
    %c0 = arith.constant 0 : index
    %c0_0 = arith.constant 0 : index
    %0 = vector.load %arg2[%c0, %c0_0] : memref<32x128xf32, #tpu.memory_space<vmem>>, vector<32x128xf32>
    %c0_1 = arith.constant 0 : index
    %c0_2 = arith.constant 0 : index
    %1 = vector.load %arg3[%c0_1, %c0_2] : memref<128x128xf32, #tpu.memory_space<vmem>>, vector<128x128xf32>
    %cst = arith.constant dense<0.000000e+00> : vector<32x128xf32>
    %2 = tpu.matmul %0, %1, %cst {dimension_numbers = #tpu.dot_dimension_numbers<[1], [0], [0], [1], [0, 0, 1, 1], [], []>} : vector<32x128xf32>, vector<128x128xf32>, vector<32x128xf32> -> vector<32x128xf32>
    %c0_3 = arith.constant 0 : index
    %c0_4 = arith.constant 0 : index
    %3 = vector.load %arg4[%c0_3, %c0_4] : memref<1x128xf32, #tpu.memory_space<vmem>>, vector<1x128xf32>
    %4 = vector.broadcast %3 : vector<1x128xf32> to vector<32x128xf32>
    %5 = arith.addf %2, %4 : vector<32x128xf32>
    %c0_5 = arith.constant 0 : index
    %c0_6 = arith.constant 0 : index
    %6 = vector.load %arg5[%c0_5, %c0_6] : memref<32x128xf32, #tpu.memory_space<vmem>>, vector<32x128xf32>
    tpu.vector_store %arg5[%c0_5, %c0_6], %5 {strides = array<i32>} : memref<32x128xf32, #tpu.memory_space<vmem>>, vector<32x128xf32>,
    return
  }
  func.func @transform_0(%arg0: i32, %arg1: i32) -> (i32, i32) {
    %c0_i32 = arith.constant 0 : i32
    %c0_i32_0 = arith.constant 0 : i32
    return %arg0, %c0_i32 : i32, i32
  }
  func.func @transform_1(%arg0: i32, %arg1: i32) -> (i32, i32) {
    %c0_i32 = arith.constant 0 : i32
    %c0_i32_0 = arith.constant 0 : i32
    return %c0_i32, %arg1 : i32, i32
  }
  func.func @transform_2(%arg0: i32, %arg1: i32) -> (i32, i32) {
    %c0_i32 = arith.constant 0 : i32
    %c0_i32_0 = arith.constant 0 : i32
    return %c0_i32, %arg1 : i32, i32
  }
  func.func @transform_3(%arg0: i32, %arg1: i32) -> (i32, i32) {
    %c0_i32 = arith.constant 0 : i32
    return %arg0, %arg1 : i32, i32
  }
}

module attributes {stable_mosaic.version = 11 : i64} {
  func.func @_lstm_recurrence_kernel(%arg0: i32, %arg1: i32, %arg2: memref<8x8x512xf32, #tpu.memory_space<vmem>>, %arg3: memref<8x128xf32, #tpu.memory_space<vmem>>, %arg4: memref<128x512xf32, #tpu.memory_space<vmem>>, %arg5: memref<8x8x128xf32, #tpu.memory_space<vmem>>, %arg6: memref<8x128xf32, #tpu.memory_space<vmem>>, %arg7: memref<8x128xf32, #tpu.memory_space<vmem>>) attributes {dimension_semantics = [#tpu.dimension_semantics<parallel>, #tpu.dimension_semantics<arbitrary>], iteration_bounds = array<i64: 1, 1>, scalar_prefetch = 0 : i64, scratch_operands = 2 : i64, tpu.core_type = #tpu.core_type<tc>, window_params = [{transform_indices = @transform_0, window_bounds = array<i64: 8, 8, 512>}, {transform_indices = @transform_1, window_bounds = array<i64: 8, 128>}, {pipeline_mode = #tpu.pipeline_mode<synchronous>, transform_indices = @transform_2, window_bounds = array<i64: 128, 512>}, {transform_indices = @transform_3, window_bounds = array<i64: 8, 8, 128>}]} {
    %c0_i32 = arith.constant 0 : i32
    %0 = arith.cmpi eq, %arg1, %c0_i32 : i32
    %1 = arith.extui %0 : i1 to i32
    %c0_i32_0 = arith.constant 0 : i32
    %2 = arith.cmpi ne, %1, %c0_i32_0 : i32
    scf.if %2 {
      %c0_144 = arith.constant 0 : index
      %c0_145 = arith.constant 0 : index
      %315 = vector.load %arg3[%c0_144, %c0_145] : memref<8x128xf32, #tpu.memory_space<vmem>>, vector<8x128xf32>
      %c0_146 = arith.constant 0 : index
      %c0_147 = arith.constant 0 : index
      %316 = vector.load %arg6[%c0_146, %c0_147] : memref<8x128xf32, #tpu.memory_space<vmem>>, vector<8x128xf32>
      tpu.vector_store %arg6[%c0_146, %c0_147], %315 {strides = array<i32>} : memref<8x128xf32, #tpu.memory_space<vmem>>, vector<8x128xf32>,
      %cst_148 = arith.constant 0.000000e+00 : f32
      %317 = vector.broadcast %cst_148 : f32 to vector<8x128xf32>
      %c0_149 = arith.constant 0 : index
      %c0_150 = arith.constant 0 : index
      %318 = vector.load %arg7[%c0_149, %c0_150] : memref<8x128xf32, #tpu.memory_space<vmem>>, vector<8x128xf32>
      tpu.vector_store %arg7[%c0_149, %c0_150], %317 {strides = array<i32>} : memref<8x128xf32, #tpu.memory_space<vmem>>, vector<8x128xf32>,
    } else {
    }
    %c0_i32_1 = arith.constant 0 : i32
    %c0 = arith.constant 0 : index
    %c0_2 = arith.constant 0 : index
    %3 = vector.load %arg6[%c0, %c0_2] : memref<8x128xf32, #tpu.memory_space<vmem>>, vector<8x128xf32>
    %c0_3 = arith.constant 0 : index
    %c0_4 = arith.constant 0 : index
    %4 = vector.load %arg7[%c0_3, %c0_4] : memref<8x128xf32, #tpu.memory_space<vmem>>, vector<8x128xf32>
    %5 = arith.index_cast %c0_i32_1 : i32 to index
    %c0_5 = arith.constant 0 : index
    %c0_6 = arith.constant 0 : index
    %6 = vector.load %arg2[%5, %c0_5, %c0_6] : memref<8x8x512xf32, #tpu.memory_space<vmem>>, vector<1x8x512xf32>
    %7 = vector.shape_cast %6 : vector<1x8x512xf32> to vector<8x512xf32>
    %c0_7 = arith.constant 0 : index
    %c0_8 = arith.constant 0 : index
    %8 = vector.load %arg4[%c0_7, %c0_8] : memref<128x512xf32, #tpu.memory_space<vmem>>, vector<128x512xf32>
    %cst = arith.constant dense<0.000000e+00> : vector<8x512xf32>
    %9 = tpu.matmul %3, %8, %cst {dimension_numbers = #tpu.dot_dimension_numbers<[1], [0], [0], [1], [0, 0, 1, 1], [], []>} : vector<8x128xf32>, vector<128x512xf32>, vector<8x512xf32> -> vector<8x512xf32>
    %10 = arith.addf %7, %9 : vector<8x512xf32>
    %11 = vector.extract_strided_slice %10 {offsets = [0, 0], sizes = [8, 128], strides = [1, 1]} : vector<8x512xf32> to vector<8x128xf32>
    %12 = arith.negf %11 : vector<8x128xf32>
    %13 = math.exp %12 : vector<8x128xf32>
    %cst_9 = arith.constant 1.000000e+00 : f32
    %14 = vector.broadcast %cst_9 : f32 to vector<8x128xf32>
    %15 = arith.addf %14, %13 : vector<8x128xf32>
    %16 = arith.divf %14, %15 : vector<8x128xf32>
    %17 = vector.extract_strided_slice %10 {offsets = [0, 128], sizes = [8, 128], strides = [1, 1]} : vector<8x512xf32> to vector<8x128xf32>
    %18 = arith.negf %17 : vector<8x128xf32>
    %19 = math.exp %18 : vector<8x128xf32>
    %cst_10 = arith.constant 1.000000e+00 : f32
    %20 = vector.broadcast %cst_10 : f32 to vector<8x128xf32>
    %21 = arith.addf %20, %19 : vector<8x128xf32>
    %22 = arith.divf %20, %21 : vector<8x128xf32>
    %23 = vector.extract_strided_slice %10 {offsets = [0, 256], sizes = [8, 128], strides = [1, 1]} : vector<8x512xf32> to vector<8x128xf32>
    %24 = math.tanh %23 : vector<8x128xf32>
    %25 = vector.extract_strided_slice %10 {offsets = [0, 384], sizes = [8, 128], strides = [1, 1]} : vector<8x512xf32> to vector<8x128xf32>
    %26 = arith.negf %25 : vector<8x128xf32>
    %27 = math.exp %26 : vector<8x128xf32>
    %cst_11 = arith.constant 1.000000e+00 : f32
    %28 = vector.broadcast %cst_11 : f32 to vector<8x128xf32>
    %29 = arith.addf %28, %27 : vector<8x128xf32>
    %30 = arith.divf %28, %29 : vector<8x128xf32>
    %31 = arith.mulf %22, %4 : vector<8x128xf32>
    %32 = arith.mulf %16, %24 : vector<8x128xf32>
    %33 = arith.addf %31, %32 : vector<8x128xf32>
    %34 = math.tanh %33 : vector<8x128xf32>
    %35 = arith.mulf %30, %34 : vector<8x128xf32>
    %c0_12 = arith.constant 0 : index
    %c0_13 = arith.constant 0 : index
    %36 = vector.load %arg7[%c0_12, %c0_13] : memref<8x128xf32, #tpu.memory_space<vmem>>, vector<8x128xf32>
    tpu.vector_store %arg7[%c0_12, %c0_13], %33 {strides = array<i32>} : memref<8x128xf32, #tpu.memory_space<vmem>>, vector<8x128xf32>,
    %c0_14 = arith.constant 0 : index
    %c0_15 = arith.constant 0 : index
    %37 = vector.load %arg6[%c0_14, %c0_15] : memref<8x128xf32, #tpu.memory_space<vmem>>, vector<8x128xf32>
    tpu.vector_store %arg6[%c0_14, %c0_15], %35 {strides = array<i32>} : memref<8x128xf32, #tpu.memory_space<vmem>>, vector<8x128xf32>,
    %38 = arith.index_cast %c0_i32_1 : i32 to index
    %c0_16 = arith.constant 0 : index
    %c0_17 = arith.constant 0 : index
    %39 = vector.load %arg5[%38, %c0_16, %c0_17] : memref<8x8x128xf32, #tpu.memory_space<vmem>>, vector<1x8x128xf32>
    %40 = vector.shape_cast %39 : vector<1x8x128xf32> to vector<8x128xf32>
    %41 = vector.shape_cast %35 : vector<8x128xf32> to vector<1x8x128xf32>
    tpu.vector_store %arg5[%38, %c0_16, %c0_17], %41 {strides = array<i32>} : memref<8x8x128xf32, #tpu.memory_space<vmem>>, vector<1x8x128xf32>,
    %c1_i32 = arith.constant 1 : i32
    %c0_18 = arith.constant 0 : index
    %c0_19 = arith.constant 0 : index
    %42 = vector.load %arg6[%c0_18, %c0_19] : memref<8x128xf32, #tpu.memory_space<vmem>>, vector<8x128xf32>
    %c0_20 = arith.constant 0 : index
    %c0_21 = arith.constant 0 : index
    %43 = vector.load %arg7[%c0_20, %c0_21] : memref<8x128xf32, #tpu.memory_space<vmem>>, vector<8x128xf32>
    %44 = arith.index_cast %c1_i32 : i32 to index
    %c0_22 = arith.constant 0 : index
    %c0_23 = arith.constant 0 : index
    %45 = vector.load %arg2[%44, %c0_22, %c0_23] : memref<8x8x512xf32, #tpu.memory_space<vmem>>, vector<1x8x512xf32>
    %46 = vector.shape_cast %45 : vector<1x8x512xf32> to vector<8x512xf32>
    %c0_24 = arith.constant 0 : index
    %c0_25 = arith.constant 0 : index
    %47 = vector.load %arg4[%c0_24, %c0_25] : memref<128x512xf32, #tpu.memory_space<vmem>>, vector<128x512xf32>
    %cst_26 = arith.constant dense<0.000000e+00> : vector<8x512xf32>
    %48 = tpu.matmul %42, %47, %cst_26 {dimension_numbers = #tpu.dot_dimension_numbers<[1], [0], [0], [1], [0, 0, 1, 1], [], []>} : vector<8x128xf32>, vector<128x512xf32>, vector<8x512xf32> -> vector<8x512xf32>
    %49 = arith.addf %46, %48 : vector<8x512xf32>
    %50 = vector.extract_strided_slice %49 {offsets = [0, 0], sizes = [8, 128], strides = [1, 1]} : vector<8x512xf32> to vector<8x128xf32>
    %51 = arith.negf %50 : vector<8x128xf32>
    %52 = math.exp %51 : vector<8x128xf32>
    %cst_27 = arith.constant 1.000000e+00 : f32
    %53 = vector.broadcast %cst_27 : f32 to vector<8x128xf32>
    %54 = arith.addf %53, %52 : vector<8x128xf32>
    %55 = arith.divf %53, %54 : vector<8x128xf32>
    %56 = vector.extract_strided_slice %49 {offsets = [0, 128], sizes = [8, 128], strides = [1, 1]} : vector<8x512xf32> to vector<8x128xf32>
    %57 = arith.negf %56 : vector<8x128xf32>
    %58 = math.exp %57 : vector<8x128xf32>
    %cst_28 = arith.constant 1.000000e+00 : f32
    %59 = vector.broadcast %cst_28 : f32 to vector<8x128xf32>
    %60 = arith.addf %59, %58 : vector<8x128xf32>
    %61 = arith.divf %59, %60 : vector<8x128xf32>
    %62 = vector.extract_strided_slice %49 {offsets = [0, 256], sizes = [8, 128], strides = [1, 1]} : vector<8x512xf32> to vector<8x128xf32>
    %63 = math.tanh %62 : vector<8x128xf32>
    %64 = vector.extract_strided_slice %49 {offsets = [0, 384], sizes = [8, 128], strides = [1, 1]} : vector<8x512xf32> to vector<8x128xf32>
    %65 = arith.negf %64 : vector<8x128xf32>
    %66 = math.exp %65 : vector<8x128xf32>
    %cst_29 = arith.constant 1.000000e+00 : f32
    %67 = vector.broadcast %cst_29 : f32 to vector<8x128xf32>
    %68 = arith.addf %67, %66 : vector<8x128xf32>
    %69 = arith.divf %67, %68 : vector<8x128xf32>
    %70 = arith.mulf %61, %43 : vector<8x128xf32>
    %71 = arith.mulf %55, %63 : vector<8x128xf32>
    %72 = arith.addf %70, %71 : vector<8x128xf32>
    %73 = math.tanh %72 : vector<8x128xf32>
    %74 = arith.mulf %69, %73 : vector<8x128xf32>
    %c0_30 = arith.constant 0 : index
    %c0_31 = arith.constant 0 : index
    %75 = vector.load %arg7[%c0_30, %c0_31] : memref<8x128xf32, #tpu.memory_space<vmem>>, vector<8x128xf32>
    tpu.vector_store %arg7[%c0_30, %c0_31], %72 {strides = array<i32>} : memref<8x128xf32, #tpu.memory_space<vmem>>, vector<8x128xf32>,
    %c0_32 = arith.constant 0 : index
    %c0_33 = arith.constant 0 : index
    %76 = vector.load %arg6[%c0_32, %c0_33] : memref<8x128xf32, #tpu.memory_space<vmem>>, vector<8x128xf32>
    tpu.vector_store %arg6[%c0_32, %c0_33], %74 {strides = array<i32>} : memref<8x128xf32, #tpu.memory_space<vmem>>, vector<8x128xf32>,
    %77 = arith.index_cast %c1_i32 : i32 to index
    %c0_34 = arith.constant 0 : index
    %c0_35 = arith.constant 0 : index
    %78 = vector.load %arg5[%77, %c0_34, %c0_35] : memref<8x8x128xf32, #tpu.memory_space<vmem>>, vector<1x8x128xf32>
    %79 = vector.shape_cast %78 : vector<1x8x128xf32> to vector<8x128xf32>
    %80 = vector.shape_cast %74 : vector<8x128xf32> to vector<1x8x128xf32>
    tpu.vector_store %arg5[%77, %c0_34, %c0_35], %80 {strides = array<i32>} : memref<8x8x128xf32, #tpu.memory_space<vmem>>, vector<1x8x128xf32>,
    %c2_i32 = arith.constant 2 : i32
    %c0_36 = arith.constant 0 : index
    %c0_37 = arith.constant 0 : index
    %81 = vector.load %arg6[%c0_36, %c0_37] : memref<8x128xf32, #tpu.memory_space<vmem>>, vector<8x128xf32>
    %c0_38 = arith.constant 0 : index
    %c0_39 = arith.constant 0 : index
    %82 = vector.load %arg7[%c0_38, %c0_39] : memref<8x128xf32, #tpu.memory_space<vmem>>, vector<8x128xf32>
    %83 = arith.index_cast %c2_i32 : i32 to index
    %c0_40 = arith.constant 0 : index
    %c0_41 = arith.constant 0 : index
    %84 = vector.load %arg2[%83, %c0_40, %c0_41] : memref<8x8x512xf32, #tpu.memory_space<vmem>>, vector<1x8x512xf32>
    %85 = vector.shape_cast %84 : vector<1x8x512xf32> to vector<8x512xf32>
    %c0_42 = arith.constant 0 : index
    %c0_43 = arith.constant 0 : index
    %86 = vector.load %arg4[%c0_42, %c0_43] : memref<128x512xf32, #tpu.memory_space<vmem>>, vector<128x512xf32>
    %cst_44 = arith.constant dense<0.000000e+00> : vector<8x512xf32>
    %87 = tpu.matmul %81, %86, %cst_44 {dimension_numbers = #tpu.dot_dimension_numbers<[1], [0], [0], [1], [0, 0, 1, 1], [], []>} : vector<8x128xf32>, vector<128x512xf32>, vector<8x512xf32> -> vector<8x512xf32>
    %88 = arith.addf %85, %87 : vector<8x512xf32>
    %89 = vector.extract_strided_slice %88 {offsets = [0, 0], sizes = [8, 128], strides = [1, 1]} : vector<8x512xf32> to vector<8x128xf32>
    %90 = arith.negf %89 : vector<8x128xf32>
    %91 = math.exp %90 : vector<8x128xf32>
    %cst_45 = arith.constant 1.000000e+00 : f32
    %92 = vector.broadcast %cst_45 : f32 to vector<8x128xf32>
    %93 = arith.addf %92, %91 : vector<8x128xf32>
    %94 = arith.divf %92, %93 : vector<8x128xf32>
    %95 = vector.extract_strided_slice %88 {offsets = [0, 128], sizes = [8, 128], strides = [1, 1]} : vector<8x512xf32> to vector<8x128xf32>
    %96 = arith.negf %95 : vector<8x128xf32>
    %97 = math.exp %96 : vector<8x128xf32>
    %cst_46 = arith.constant 1.000000e+00 : f32
    %98 = vector.broadcast %cst_46 : f32 to vector<8x128xf32>
    %99 = arith.addf %98, %97 : vector<8x128xf32>
    %100 = arith.divf %98, %99 : vector<8x128xf32>
    %101 = vector.extract_strided_slice %88 {offsets = [0, 256], sizes = [8, 128], strides = [1, 1]} : vector<8x512xf32> to vector<8x128xf32>
    %102 = math.tanh %101 : vector<8x128xf32>
    %103 = vector.extract_strided_slice %88 {offsets = [0, 384], sizes = [8, 128], strides = [1, 1]} : vector<8x512xf32> to vector<8x128xf32>
    %104 = arith.negf %103 : vector<8x128xf32>
    %105 = math.exp %104 : vector<8x128xf32>
    %cst_47 = arith.constant 1.000000e+00 : f32
    %106 = vector.broadcast %cst_47 : f32 to vector<8x128xf32>
    %107 = arith.addf %106, %105 : vector<8x128xf32>
    %108 = arith.divf %106, %107 : vector<8x128xf32>
    %109 = arith.mulf %100, %82 : vector<8x128xf32>
    %110 = arith.mulf %94, %102 : vector<8x128xf32>
    %111 = arith.addf %109, %110 : vector<8x128xf32>
    %112 = math.tanh %111 : vector<8x128xf32>
    %113 = arith.mulf %108, %112 : vector<8x128xf32>
    %c0_48 = arith.constant 0 : index
    %c0_49 = arith.constant 0 : index
    %114 = vector.load %arg7[%c0_48, %c0_49] : memref<8x128xf32, #tpu.memory_space<vmem>>, vector<8x128xf32>
    tpu.vector_store %arg7[%c0_48, %c0_49], %111 {strides = array<i32>} : memref<8x128xf32, #tpu.memory_space<vmem>>, vector<8x128xf32>,
    %c0_50 = arith.constant 0 : index
    %c0_51 = arith.constant 0 : index
    %115 = vector.load %arg6[%c0_50, %c0_51] : memref<8x128xf32, #tpu.memory_space<vmem>>, vector<8x128xf32>
    tpu.vector_store %arg6[%c0_50, %c0_51], %113 {strides = array<i32>} : memref<8x128xf32, #tpu.memory_space<vmem>>, vector<8x128xf32>,
    %116 = arith.index_cast %c2_i32 : i32 to index
    %c0_52 = arith.constant 0 : index
    %c0_53 = arith.constant 0 : index
    %117 = vector.load %arg5[%116, %c0_52, %c0_53] : memref<8x8x128xf32, #tpu.memory_space<vmem>>, vector<1x8x128xf32>
    %118 = vector.shape_cast %117 : vector<1x8x128xf32> to vector<8x128xf32>
    %119 = vector.shape_cast %113 : vector<8x128xf32> to vector<1x8x128xf32>
    tpu.vector_store %arg5[%116, %c0_52, %c0_53], %119 {strides = array<i32>} : memref<8x8x128xf32, #tpu.memory_space<vmem>>, vector<1x8x128xf32>,
    %c3_i32 = arith.constant 3 : i32
    %c0_54 = arith.constant 0 : index
    %c0_55 = arith.constant 0 : index
    %120 = vector.load %arg6[%c0_54, %c0_55] : memref<8x128xf32, #tpu.memory_space<vmem>>, vector<8x128xf32>
    %c0_56 = arith.constant 0 : index
    %c0_57 = arith.constant 0 : index
    %121 = vector.load %arg7[%c0_56, %c0_57] : memref<8x128xf32, #tpu.memory_space<vmem>>, vector<8x128xf32>
    %122 = arith.index_cast %c3_i32 : i32 to index
    %c0_58 = arith.constant 0 : index
    %c0_59 = arith.constant 0 : index
    %123 = vector.load %arg2[%122, %c0_58, %c0_59] : memref<8x8x512xf32, #tpu.memory_space<vmem>>, vector<1x8x512xf32>
    %124 = vector.shape_cast %123 : vector<1x8x512xf32> to vector<8x512xf32>
    %c0_60 = arith.constant 0 : index
    %c0_61 = arith.constant 0 : index
    %125 = vector.load %arg4[%c0_60, %c0_61] : memref<128x512xf32, #tpu.memory_space<vmem>>, vector<128x512xf32>
    %cst_62 = arith.constant dense<0.000000e+00> : vector<8x512xf32>
    %126 = tpu.matmul %120, %125, %cst_62 {dimension_numbers = #tpu.dot_dimension_numbers<[1], [0], [0], [1], [0, 0, 1, 1], [], []>} : vector<8x128xf32>, vector<128x512xf32>, vector<8x512xf32> -> vector<8x512xf32>
    %127 = arith.addf %124, %126 : vector<8x512xf32>
    %128 = vector.extract_strided_slice %127 {offsets = [0, 0], sizes = [8, 128], strides = [1, 1]} : vector<8x512xf32> to vector<8x128xf32>
    %129 = arith.negf %128 : vector<8x128xf32>
    %130 = math.exp %129 : vector<8x128xf32>
    %cst_63 = arith.constant 1.000000e+00 : f32
    %131 = vector.broadcast %cst_63 : f32 to vector<8x128xf32>
    %132 = arith.addf %131, %130 : vector<8x128xf32>
    %133 = arith.divf %131, %132 : vector<8x128xf32>
    %134 = vector.extract_strided_slice %127 {offsets = [0, 128], sizes = [8, 128], strides = [1, 1]} : vector<8x512xf32> to vector<8x128xf32>
    %135 = arith.negf %134 : vector<8x128xf32>
    %136 = math.exp %135 : vector<8x128xf32>
    %cst_64 = arith.constant 1.000000e+00 : f32
    %137 = vector.broadcast %cst_64 : f32 to vector<8x128xf32>
    %138 = arith.addf %137, %136 : vector<8x128xf32>
    %139 = arith.divf %137, %138 : vector<8x128xf32>
    %140 = vector.extract_strided_slice %127 {offsets = [0, 256], sizes = [8, 128], strides = [1, 1]} : vector<8x512xf32> to vector<8x128xf32>
    %141 = math.tanh %140 : vector<8x128xf32>
    %142 = vector.extract_strided_slice %127 {offsets = [0, 384], sizes = [8, 128], strides = [1, 1]} : vector<8x512xf32> to vector<8x128xf32>
    %143 = arith.negf %142 : vector<8x128xf32>
    %144 = math.exp %143 : vector<8x128xf32>
    %cst_65 = arith.constant 1.000000e+00 : f32
    %145 = vector.broadcast %cst_65 : f32 to vector<8x128xf32>
    %146 = arith.addf %145, %144 : vector<8x128xf32>
    %147 = arith.divf %145, %146 : vector<8x128xf32>
    %148 = arith.mulf %139, %121 : vector<8x128xf32>
    %149 = arith.mulf %133, %141 : vector<8x128xf32>
    %150 = arith.addf %148, %149 : vector<8x128xf32>
    %151 = math.tanh %150 : vector<8x128xf32>
    %152 = arith.mulf %147, %151 : vector<8x128xf32>
    %c0_66 = arith.constant 0 : index
    %c0_67 = arith.constant 0 : index
    %153 = vector.load %arg7[%c0_66, %c0_67] : memref<8x128xf32, #tpu.memory_space<vmem>>, vector<8x128xf32>
    tpu.vector_store %arg7[%c0_66, %c0_67], %150 {strides = array<i32>} : memref<8x128xf32, #tpu.memory_space<vmem>>, vector<8x128xf32>,
    %c0_68 = arith.constant 0 : index
    %c0_69 = arith.constant 0 : index
    %154 = vector.load %arg6[%c0_68, %c0_69] : memref<8x128xf32, #tpu.memory_space<vmem>>, vector<8x128xf32>
    tpu.vector_store %arg6[%c0_68, %c0_69], %152 {strides = array<i32>} : memref<8x128xf32, #tpu.memory_space<vmem>>, vector<8x128xf32>,
    %155 = arith.index_cast %c3_i32 : i32 to index
    %c0_70 = arith.constant 0 : index
    %c0_71 = arith.constant 0 : index
    %156 = vector.load %arg5[%155, %c0_70, %c0_71] : memref<8x8x128xf32, #tpu.memory_space<vmem>>, vector<1x8x128xf32>
    %157 = vector.shape_cast %156 : vector<1x8x128xf32> to vector<8x128xf32>
    %158 = vector.shape_cast %152 : vector<8x128xf32> to vector<1x8x128xf32>
    tpu.vector_store %arg5[%155, %c0_70, %c0_71], %158 {strides = array<i32>} : memref<8x8x128xf32, #tpu.memory_space<vmem>>, vector<1x8x128xf32>,
    %c4_i32 = arith.constant 4 : i32
    %c0_72 = arith.constant 0 : index
    %c0_73 = arith.constant 0 : index
    %159 = vector.load %arg6[%c0_72, %c0_73] : memref<8x128xf32, #tpu.memory_space<vmem>>, vector<8x128xf32>
    %c0_74 = arith.constant 0 : index
    %c0_75 = arith.constant 0 : index
    %160 = vector.load %arg7[%c0_74, %c0_75] : memref<8x128xf32, #tpu.memory_space<vmem>>, vector<8x128xf32>
    %161 = arith.index_cast %c4_i32 : i32 to index
    %c0_76 = arith.constant 0 : index
    %c0_77 = arith.constant 0 : index
    %162 = vector.load %arg2[%161, %c0_76, %c0_77] : memref<8x8x512xf32, #tpu.memory_space<vmem>>, vector<1x8x512xf32>
    %163 = vector.shape_cast %162 : vector<1x8x512xf32> to vector<8x512xf32>
    %c0_78 = arith.constant 0 : index
    %c0_79 = arith.constant 0 : index
    %164 = vector.load %arg4[%c0_78, %c0_79] : memref<128x512xf32, #tpu.memory_space<vmem>>, vector<128x512xf32>
    %cst_80 = arith.constant dense<0.000000e+00> : vector<8x512xf32>
    %165 = tpu.matmul %159, %164, %cst_80 {dimension_numbers = #tpu.dot_dimension_numbers<[1], [0], [0], [1], [0, 0, 1, 1], [], []>} : vector<8x128xf32>, vector<128x512xf32>, vector<8x512xf32> -> vector<8x512xf32>
    %166 = arith.addf %163, %165 : vector<8x512xf32>
    %167 = vector.extract_strided_slice %166 {offsets = [0, 0], sizes = [8, 128], strides = [1, 1]} : vector<8x512xf32> to vector<8x128xf32>
    %168 = arith.negf %167 : vector<8x128xf32>
    %169 = math.exp %168 : vector<8x128xf32>
    %cst_81 = arith.constant 1.000000e+00 : f32
    %170 = vector.broadcast %cst_81 : f32 to vector<8x128xf32>
    %171 = arith.addf %170, %169 : vector<8x128xf32>
    %172 = arith.divf %170, %171 : vector<8x128xf32>
    %173 = vector.extract_strided_slice %166 {offsets = [0, 128], sizes = [8, 128], strides = [1, 1]} : vector<8x512xf32> to vector<8x128xf32>
    %174 = arith.negf %173 : vector<8x128xf32>
    %175 = math.exp %174 : vector<8x128xf32>
    %cst_82 = arith.constant 1.000000e+00 : f32
    %176 = vector.broadcast %cst_82 : f32 to vector<8x128xf32>
    %177 = arith.addf %176, %175 : vector<8x128xf32>
    %178 = arith.divf %176, %177 : vector<8x128xf32>
    %179 = vector.extract_strided_slice %166 {offsets = [0, 256], sizes = [8, 128], strides = [1, 1]} : vector<8x512xf32> to vector<8x128xf32>
    %180 = math.tanh %179 : vector<8x128xf32>
    %181 = vector.extract_strided_slice %166 {offsets = [0, 384], sizes = [8, 128], strides = [1, 1]} : vector<8x512xf32> to vector<8x128xf32>
    %182 = arith.negf %181 : vector<8x128xf32>
    %183 = math.exp %182 : vector<8x128xf32>
    %cst_83 = arith.constant 1.000000e+00 : f32
    %184 = vector.broadcast %cst_83 : f32 to vector<8x128xf32>
    %185 = arith.addf %184, %183 : vector<8x128xf32>
    %186 = arith.divf %184, %185 : vector<8x128xf32>
    %187 = arith.mulf %178, %160 : vector<8x128xf32>
    %188 = arith.mulf %172, %180 : vector<8x128xf32>
    %189 = arith.addf %187, %188 : vector<8x128xf32>
    %190 = math.tanh %189 : vector<8x128xf32>
    %191 = arith.mulf %186, %190 : vector<8x128xf32>
    %c0_84 = arith.constant 0 : index
    %c0_85 = arith.constant 0 : index
    %192 = vector.load %arg7[%c0_84, %c0_85] : memref<8x128xf32, #tpu.memory_space<vmem>>, vector<8x128xf32>
    tpu.vector_store %arg7[%c0_84, %c0_85], %189 {strides = array<i32>} : memref<8x128xf32, #tpu.memory_space<vmem>>, vector<8x128xf32>,
    %c0_86 = arith.constant 0 : index
    %c0_87 = arith.constant 0 : index
    %193 = vector.load %arg6[%c0_86, %c0_87] : memref<8x128xf32, #tpu.memory_space<vmem>>, vector<8x128xf32>
    tpu.vector_store %arg6[%c0_86, %c0_87], %191 {strides = array<i32>} : memref<8x128xf32, #tpu.memory_space<vmem>>, vector<8x128xf32>,
    %194 = arith.index_cast %c4_i32 : i32 to index
    %c0_88 = arith.constant 0 : index
    %c0_89 = arith.constant 0 : index
    %195 = vector.load %arg5[%194, %c0_88, %c0_89] : memref<8x8x128xf32, #tpu.memory_space<vmem>>, vector<1x8x128xf32>
    %196 = vector.shape_cast %195 : vector<1x8x128xf32> to vector<8x128xf32>
    %197 = vector.shape_cast %191 : vector<8x128xf32> to vector<1x8x128xf32>
    tpu.vector_store %arg5[%194, %c0_88, %c0_89], %197 {strides = array<i32>} : memref<8x8x128xf32, #tpu.memory_space<vmem>>, vector<1x8x128xf32>,
    %c5_i32 = arith.constant 5 : i32
    %c0_90 = arith.constant 0 : index
    %c0_91 = arith.constant 0 : index
    %198 = vector.load %arg6[%c0_90, %c0_91] : memref<8x128xf32, #tpu.memory_space<vmem>>, vector<8x128xf32>
    %c0_92 = arith.constant 0 : index
    %c0_93 = arith.constant 0 : index
    %199 = vector.load %arg7[%c0_92, %c0_93] : memref<8x128xf32, #tpu.memory_space<vmem>>, vector<8x128xf32>
    %200 = arith.index_cast %c5_i32 : i32 to index
    %c0_94 = arith.constant 0 : index
    %c0_95 = arith.constant 0 : index
    %201 = vector.load %arg2[%200, %c0_94, %c0_95] : memref<8x8x512xf32, #tpu.memory_space<vmem>>, vector<1x8x512xf32>
    %202 = vector.shape_cast %201 : vector<1x8x512xf32> to vector<8x512xf32>
    %c0_96 = arith.constant 0 : index
    %c0_97 = arith.constant 0 : index
    %203 = vector.load %arg4[%c0_96, %c0_97] : memref<128x512xf32, #tpu.memory_space<vmem>>, vector<128x512xf32>
    %cst_98 = arith.constant dense<0.000000e+00> : vector<8x512xf32>
    %204 = tpu.matmul %198, %203, %cst_98 {dimension_numbers = #tpu.dot_dimension_numbers<[1], [0], [0], [1], [0, 0, 1, 1], [], []>} : vector<8x128xf32>, vector<128x512xf32>, vector<8x512xf32> -> vector<8x512xf32>
    %205 = arith.addf %202, %204 : vector<8x512xf32>
    %206 = vector.extract_strided_slice %205 {offsets = [0, 0], sizes = [8, 128], strides = [1, 1]} : vector<8x512xf32> to vector<8x128xf32>
    %207 = arith.negf %206 : vector<8x128xf32>
    %208 = math.exp %207 : vector<8x128xf32>
    %cst_99 = arith.constant 1.000000e+00 : f32
    %209 = vector.broadcast %cst_99 : f32 to vector<8x128xf32>
    %210 = arith.addf %209, %208 : vector<8x128xf32>
    %211 = arith.divf %209, %210 : vector<8x128xf32>
    %212 = vector.extract_strided_slice %205 {offsets = [0, 128], sizes = [8, 128], strides = [1, 1]} : vector<8x512xf32> to vector<8x128xf32>
    %213 = arith.negf %212 : vector<8x128xf32>
    %214 = math.exp %213 : vector<8x128xf32>
    %cst_100 = arith.constant 1.000000e+00 : f32
    %215 = vector.broadcast %cst_100 : f32 to vector<8x128xf32>
    %216 = arith.addf %215, %214 : vector<8x128xf32>
    %217 = arith.divf %215, %216 : vector<8x128xf32>
    %218 = vector.extract_strided_slice %205 {offsets = [0, 256], sizes = [8, 128], strides = [1, 1]} : vector<8x512xf32> to vector<8x128xf32>
    %219 = math.tanh %218 : vector<8x128xf32>
    %220 = vector.extract_strided_slice %205 {offsets = [0, 384], sizes = [8, 128], strides = [1, 1]} : vector<8x512xf32> to vector<8x128xf32>
    %221 = arith.negf %220 : vector<8x128xf32>
    %222 = math.exp %221 : vector<8x128xf32>
    %cst_101 = arith.constant 1.000000e+00 : f32
    %223 = vector.broadcast %cst_101 : f32 to vector<8x128xf32>
    %224 = arith.addf %223, %222 : vector<8x128xf32>
    %225 = arith.divf %223, %224 : vector<8x128xf32>
    %226 = arith.mulf %217, %199 : vector<8x128xf32>
    %227 = arith.mulf %211, %219 : vector<8x128xf32>
    %228 = arith.addf %226, %227 : vector<8x128xf32>
    %229 = math.tanh %228 : vector<8x128xf32>
    %230 = arith.mulf %225, %229 : vector<8x128xf32>
    %c0_102 = arith.constant 0 : index
    %c0_103 = arith.constant 0 : index
    %231 = vector.load %arg7[%c0_102, %c0_103] : memref<8x128xf32, #tpu.memory_space<vmem>>, vector<8x128xf32>
    tpu.vector_store %arg7[%c0_102, %c0_103], %228 {strides = array<i32>} : memref<8x128xf32, #tpu.memory_space<vmem>>, vector<8x128xf32>,
    %c0_104 = arith.constant 0 : index
    %c0_105 = arith.constant 0 : index
    %232 = vector.load %arg6[%c0_104, %c0_105] : memref<8x128xf32, #tpu.memory_space<vmem>>, vector<8x128xf32>
    tpu.vector_store %arg6[%c0_104, %c0_105], %230 {strides = array<i32>} : memref<8x128xf32, #tpu.memory_space<vmem>>, vector<8x128xf32>,
    %233 = arith.index_cast %c5_i32 : i32 to index
    %c0_106 = arith.constant 0 : index
    %c0_107 = arith.constant 0 : index
    %234 = vector.load %arg5[%233, %c0_106, %c0_107] : memref<8x8x128xf32, #tpu.memory_space<vmem>>, vector<1x8x128xf32>
    %235 = vector.shape_cast %234 : vector<1x8x128xf32> to vector<8x128xf32>
    %236 = vector.shape_cast %230 : vector<8x128xf32> to vector<1x8x128xf32>
    tpu.vector_store %arg5[%233, %c0_106, %c0_107], %236 {strides = array<i32>} : memref<8x8x128xf32, #tpu.memory_space<vmem>>, vector<1x8x128xf32>,
    %c6_i32 = arith.constant 6 : i32
    %c0_108 = arith.constant 0 : index
    %c0_109 = arith.constant 0 : index
    %237 = vector.load %arg6[%c0_108, %c0_109] : memref<8x128xf32, #tpu.memory_space<vmem>>, vector<8x128xf32>
    %c0_110 = arith.constant 0 : index
    %c0_111 = arith.constant 0 : index
    %238 = vector.load %arg7[%c0_110, %c0_111] : memref<8x128xf32, #tpu.memory_space<vmem>>, vector<8x128xf32>
    %239 = arith.index_cast %c6_i32 : i32 to index
    %c0_112 = arith.constant 0 : index
    %c0_113 = arith.constant 0 : index
    %240 = vector.load %arg2[%239, %c0_112, %c0_113] : memref<8x8x512xf32, #tpu.memory_space<vmem>>, vector<1x8x512xf32>
    %241 = vector.shape_cast %240 : vector<1x8x512xf32> to vector<8x512xf32>
    %c0_114 = arith.constant 0 : index
    %c0_115 = arith.constant 0 : index
    %242 = vector.load %arg4[%c0_114, %c0_115] : memref<128x512xf32, #tpu.memory_space<vmem>>, vector<128x512xf32>
    %cst_116 = arith.constant dense<0.000000e+00> : vector<8x512xf32>
    %243 = tpu.matmul %237, %242, %cst_116 {dimension_numbers = #tpu.dot_dimension_numbers<[1], [0], [0], [1], [0, 0, 1, 1], [], []>} : vector<8x128xf32>, vector<128x512xf32>, vector<8x512xf32> -> vector<8x512xf32>
    %244 = arith.addf %241, %243 : vector<8x512xf32>
    %245 = vector.extract_strided_slice %244 {offsets = [0, 0], sizes = [8, 128], strides = [1, 1]} : vector<8x512xf32> to vector<8x128xf32>
    %246 = arith.negf %245 : vector<8x128xf32>
    %247 = math.exp %246 : vector<8x128xf32>
    %cst_117 = arith.constant 1.000000e+00 : f32
    %248 = vector.broadcast %cst_117 : f32 to vector<8x128xf32>
    %249 = arith.addf %248, %247 : vector<8x128xf32>
    %250 = arith.divf %248, %249 : vector<8x128xf32>
    %251 = vector.extract_strided_slice %244 {offsets = [0, 128], sizes = [8, 128], strides = [1, 1]} : vector<8x512xf32> to vector<8x128xf32>
    %252 = arith.negf %251 : vector<8x128xf32>
    %253 = math.exp %252 : vector<8x128xf32>
    %cst_118 = arith.constant 1.000000e+00 : f32
    %254 = vector.broadcast %cst_118 : f32 to vector<8x128xf32>
    %255 = arith.addf %254, %253 : vector<8x128xf32>
    %256 = arith.divf %254, %255 : vector<8x128xf32>
    %257 = vector.extract_strided_slice %244 {offsets = [0, 256], sizes = [8, 128], strides = [1, 1]} : vector<8x512xf32> to vector<8x128xf32>
    %258 = math.tanh %257 : vector<8x128xf32>
    %259 = vector.extract_strided_slice %244 {offsets = [0, 384], sizes = [8, 128], strides = [1, 1]} : vector<8x512xf32> to vector<8x128xf32>
    %260 = arith.negf %259 : vector<8x128xf32>
    %261 = math.exp %260 : vector<8x128xf32>
    %cst_119 = arith.constant 1.000000e+00 : f32
    %262 = vector.broadcast %cst_119 : f32 to vector<8x128xf32>
    %263 = arith.addf %262, %261 : vector<8x128xf32>
    %264 = arith.divf %262, %263 : vector<8x128xf32>
    %265 = arith.mulf %256, %238 : vector<8x128xf32>
    %266 = arith.mulf %250, %258 : vector<8x128xf32>
    %267 = arith.addf %265, %266 : vector<8x128xf32>
    %268 = math.tanh %267 : vector<8x128xf32>
    %269 = arith.mulf %264, %268 : vector<8x128xf32>
    %c0_120 = arith.constant 0 : index
    %c0_121 = arith.constant 0 : index
    %270 = vector.load %arg7[%c0_120, %c0_121] : memref<8x128xf32, #tpu.memory_space<vmem>>, vector<8x128xf32>
    tpu.vector_store %arg7[%c0_120, %c0_121], %267 {strides = array<i32>} : memref<8x128xf32, #tpu.memory_space<vmem>>, vector<8x128xf32>,
    %c0_122 = arith.constant 0 : index
    %c0_123 = arith.constant 0 : index
    %271 = vector.load %arg6[%c0_122, %c0_123] : memref<8x128xf32, #tpu.memory_space<vmem>>, vector<8x128xf32>
    tpu.vector_store %arg6[%c0_122, %c0_123], %269 {strides = array<i32>} : memref<8x128xf32, #tpu.memory_space<vmem>>, vector<8x128xf32>,
    %272 = arith.index_cast %c6_i32 : i32 to index
    %c0_124 = arith.constant 0 : index
    %c0_125 = arith.constant 0 : index
    %273 = vector.load %arg5[%272, %c0_124, %c0_125] : memref<8x8x128xf32, #tpu.memory_space<vmem>>, vector<1x8x128xf32>
    %274 = vector.shape_cast %273 : vector<1x8x128xf32> to vector<8x128xf32>
    %275 = vector.shape_cast %269 : vector<8x128xf32> to vector<1x8x128xf32>
    tpu.vector_store %arg5[%272, %c0_124, %c0_125], %275 {strides = array<i32>} : memref<8x8x128xf32, #tpu.memory_space<vmem>>, vector<1x8x128xf32>,
    %c7_i32 = arith.constant 7 : i32
    %c0_126 = arith.constant 0 : index
    %c0_127 = arith.constant 0 : index
    %276 = vector.load %arg6[%c0_126, %c0_127] : memref<8x128xf32, #tpu.memory_space<vmem>>, vector<8x128xf32>
    %c0_128 = arith.constant 0 : index
    %c0_129 = arith.constant 0 : index
    %277 = vector.load %arg7[%c0_128, %c0_129] : memref<8x128xf32, #tpu.memory_space<vmem>>, vector<8x128xf32>
    %278 = arith.index_cast %c7_i32 : i32 to index
    %c0_130 = arith.constant 0 : index
    %c0_131 = arith.constant 0 : index
    %279 = vector.load %arg2[%278, %c0_130, %c0_131] : memref<8x8x512xf32, #tpu.memory_space<vmem>>, vector<1x8x512xf32>
    %280 = vector.shape_cast %279 : vector<1x8x512xf32> to vector<8x512xf32>
    %c0_132 = arith.constant 0 : index
    %c0_133 = arith.constant 0 : index
    %281 = vector.load %arg4[%c0_132, %c0_133] : memref<128x512xf32, #tpu.memory_space<vmem>>, vector<128x512xf32>
    %cst_134 = arith.constant dense<0.000000e+00> : vector<8x512xf32>
    %282 = tpu.matmul %276, %281, %cst_134 {dimension_numbers = #tpu.dot_dimension_numbers<[1], [0], [0], [1], [0, 0, 1, 1], [], []>} : vector<8x128xf32>, vector<128x512xf32>, vector<8x512xf32> -> vector<8x512xf32>
    %283 = arith.addf %280, %282 : vector<8x512xf32>
    %284 = vector.extract_strided_slice %283 {offsets = [0, 0], sizes = [8, 128], strides = [1, 1]} : vector<8x512xf32> to vector<8x128xf32>
    %285 = arith.negf %284 : vector<8x128xf32>
    %286 = math.exp %285 : vector<8x128xf32>
    %cst_135 = arith.constant 1.000000e+00 : f32
    %287 = vector.broadcast %cst_135 : f32 to vector<8x128xf32>
    %288 = arith.addf %287, %286 : vector<8x128xf32>
    %289 = arith.divf %287, %288 : vector<8x128xf32>
    %290 = vector.extract_strided_slice %283 {offsets = [0, 128], sizes = [8, 128], strides = [1, 1]} : vector<8x512xf32> to vector<8x128xf32>
    %291 = arith.negf %290 : vector<8x128xf32>
    %292 = math.exp %291 : vector<8x128xf32>
    %cst_136 = arith.constant 1.000000e+00 : f32
    %293 = vector.broadcast %cst_136 : f32 to vector<8x128xf32>
    %294 = arith.addf %293, %292 : vector<8x128xf32>
    %295 = arith.divf %293, %294 : vector<8x128xf32>
    %296 = vector.extract_strided_slice %283 {offsets = [0, 256], sizes = [8, 128], strides = [1, 1]} : vector<8x512xf32> to vector<8x128xf32>
    %297 = math.tanh %296 : vector<8x128xf32>
    %298 = vector.extract_strided_slice %283 {offsets = [0, 384], sizes = [8, 128], strides = [1, 1]} : vector<8x512xf32> to vector<8x128xf32>
    %299 = arith.negf %298 : vector<8x128xf32>
    %300 = math.exp %299 : vector<8x128xf32>
    %cst_137 = arith.constant 1.000000e+00 : f32
    %301 = vector.broadcast %cst_137 : f32 to vector<8x128xf32>
    %302 = arith.addf %301, %300 : vector<8x128xf32>
    %303 = arith.divf %301, %302 : vector<8x128xf32>
    %304 = arith.mulf %295, %277 : vector<8x128xf32>
    %305 = arith.mulf %289, %297 : vector<8x128xf32>
    %306 = arith.addf %304, %305 : vector<8x128xf32>
    %307 = math.tanh %306 : vector<8x128xf32>
    %308 = arith.mulf %303, %307 : vector<8x128xf32>
    %c0_138 = arith.constant 0 : index
    %c0_139 = arith.constant 0 : index
    %309 = vector.load %arg7[%c0_138, %c0_139] : memref<8x128xf32, #tpu.memory_space<vmem>>, vector<8x128xf32>
    tpu.vector_store %arg7[%c0_138, %c0_139], %306 {strides = array<i32>} : memref<8x128xf32, #tpu.memory_space<vmem>>, vector<8x128xf32>,
    %c0_140 = arith.constant 0 : index
    %c0_141 = arith.constant 0 : index
    %310 = vector.load %arg6[%c0_140, %c0_141] : memref<8x128xf32, #tpu.memory_space<vmem>>, vector<8x128xf32>
    tpu.vector_store %arg6[%c0_140, %c0_141], %308 {strides = array<i32>} : memref<8x128xf32, #tpu.memory_space<vmem>>, vector<8x128xf32>,
    %311 = arith.index_cast %c7_i32 : i32 to index
    %c0_142 = arith.constant 0 : index
    %c0_143 = arith.constant 0 : index
    %312 = vector.load %arg5[%311, %c0_142, %c0_143] : memref<8x8x128xf32, #tpu.memory_space<vmem>>, vector<1x8x128xf32>
    %313 = vector.shape_cast %312 : vector<1x8x128xf32> to vector<8x128xf32>
    %314 = vector.shape_cast %308 : vector<8x128xf32> to vector<1x8x128xf32>
    tpu.vector_store %arg5[%311, %c0_142, %c0_143], %314 {strides = array<i32>} : memref<8x8x128xf32, #tpu.memory_space<vmem>>, vector<1x8x128xf32>,
    %c8_i32 = arith.constant 8 : i32
    return
  }
  func.func @transform_0(%arg0: i32, %arg1: i32) -> (i32, i32, i32) {
    %c0_i32 = arith.constant 0 : i32
    %c0_i32_0 = arith.constant 0 : i32
    return %arg1, %arg0, %c0_i32 : i32, i32, i32
  }
  func.func @transform_1(%arg0: i32, %arg1: i32) -> (i32, i32) {
    %c0_i32 = arith.constant 0 : i32
    %c0_i32_0 = arith.constant 0 : i32
    return %arg0, %c0_i32 : i32, i32
  }
  func.func @transform_2(%arg0: i32, %arg1: i32) -> (i32, i32) {
    %c0_i32 = arith.constant 0 : i32
    %c0_i32_0 = arith.constant 0 : i32
    %c0_i32_1 = arith.constant 0 : i32
    return %c0_i32, %c0_i32_0 : i32, i32
  }
  func.func @transform_3(%arg0: i32, %arg1: i32) -> (i32, i32, i32) {
    %c0_i32 = arith.constant 0 : i32
    %c0_i32_0 = arith.constant 0 : i32
    return %arg1, %arg0, %c0_i32 : i32, i32, i32
  }
}

</mosaic_0001>

<bundles_post_ra>
// kernel: generative_decoder_forward.5
= control target key start
LH: loop header
LB: loop body
LE: loop exit
PB: predicated region body
PF: predicated region fallthrough
CT: control target
= control target key end

     0   :  { %s352_s0 = inlined_call_operand.vmem [shape: f32[32,128], index: 0, kind: input, shape index: {}]   ;;  %s353_s1 = inlined_call_operand.vmem [shape: f32[128,128], index: 1, kind: input, shape index: {}]   ;;  %s354_s2 = inlined_call_operand.vmem [shape: f32[1,128], index: 2, kind: input, shape index: {}]   ;;  %s355_s3 = inlined_call_operand.hbm [shape: f32[32,128], index: 3, kind: output, shape index: {}]  }
   0x1   :  { %v34_v0 = vld [vmem:[%s353_s1 + $0x78] sm:$0xff]  ;;  %v33_v1 = vld [vmem:[%s353_s1 + $0x70] sm:$0xff]  ;;  %v32_v2 = vld [vmem:[%s353_s1 + $0x68] sm:$0xff] }
   0x2   :  { %168 = vmatprep.subr.mxu0 %v34_v0  ;;  %206 = vmatprep.subr.mxu1 %v34_v0  ;;  %v31_v3 = vld [vmem:[%s353_s1 + $0x60] sm:$0xff]  ;;  %v30_v4 = vld [vmem:[%s353_s1 + $0x58] sm:$0xff] }
   0x3   :  { %169 = vmatpush3.msra.mxu0 %v34_v0  ;;  %222 = vmatpush3.msra.mxu1 %v34_v0 }
   0x4   :  { %170 = vmatprep.subr.mxu0 %v33_v1  ;;  %207 = vmatprep.subr.mxu1 %v33_v1 }
   0x5   :  { %171 = vmatpush3.msra.mxu0 %v33_v1  ;;  %223 = vmatpush3.msra.mxu1 %v33_v1 }
   0x6   :  { %172 = vmatprep.subr.mxu0 %v32_v2  ;;  %208 = vmatprep.subr.mxu1 %v32_v2 }
   0x7   :  { %173 = vmatpush3.msra.mxu0 %v32_v2  ;;  %224 = vmatpush3.msra.mxu1 %v32_v2 }
   0x8   :  { %8 = vsyncpa [#allocation3], 0  ;;  %174 = vmatprep.subr.mxu0 %v31_v3  ;;  %209 = vmatprep.subr.mxu1 %v31_v3  ;;  %v29_v5 = vld [vmem:[%s353_s1 + $0x50] sm:$0xff]  ;;  %v28_v6 = vld [vmem:[%s353_s1 + $0x48] sm:$0xff]  ;;  %s263_s26 = smov [#allocation2]  }
   0x9   :  { %175 = vmatpush3.msra.mxu0 %v31_v3  ;;  %225 = vmatpush3.msra.mxu1 %v31_v3  ;;  %v27_v7 = vld [vmem:[%s353_s1 + $0x40] sm:$0xff]  ;;  %v26_v8 = vld [vmem:[%s353_s1 + $0x38] sm:$0xff]  ;;  %v25_v9 = vld [vmem:[%s353_s1 + $0x30] sm:$0xff]  ;;  %s136_s27 = sshll.u32 %s263_s26, 4  ;;  %s137_s27 = int_to_ptr.vmem [resolvable:$true] %s136_s27 }
   0xa   :  { %176 = vmatprep.subr.mxu0 %v30_v4  ;;  %210 = vmatprep.subr.mxu1 %v30_v4  ;;  %v24_v10 = vld [vmem:[%s353_s1 + $0x28] sm:$0xff]  ;;  %v23_v11 = vld [vmem:[%s353_s1 + $0x20] sm:$0xff]  ;;  %v22_v12 = vld [vmem:[%s353_s1 + $0x18] sm:$0xff]  ;;  %p246_p1 = scmp.lt.s32.totalorder %s137_s27, %s137_s27 }
   0xb   :  { %177 = vmatpush3.msra.mxu0 %v30_v4  ;;  %226 = vmatpush3.msra.mxu1 %v30_v4  ;;  %v21_v13 = vld [vmem:[%s353_s1 + $0x10] sm:$0xff]  ;;  %v20_v14 = vld [vmem:[%s353_s1 + $0x8] sm:$0xff]  ;;  %v19_v15 = vld [vmem:[%s353_s1] sm:$0xff] }
   0xc   :  { %178 = vmatprep.subr.mxu0 %v29_v5  ;;  %211 = vmatprep.subr.mxu1 %v29_v5  ;;  %v15_v16 = vld [vmem:[%s352_s0] sm:$0xff]  ;;  %v17_v17 = vld [vmem:[%s352_s0 + $0x10] sm:$0xff]  ;;  %v16_v18 = vld [vmem:[%s352_s0 + $0x8] sm:$0xff] }
   0xd   :  { %179 = vmatpush3.msra.mxu0 %v29_v5  ;;  %227 = vmatpush3.msra.mxu1 %v29_v5  ;;  %v18_v19 = vld [vmem:[%s352_s0 + $0x18] sm:$0xff]  ;;  %v147_v20 = vld [vmem:[%s354_s2] ss:$0 sm:$0xff]  ;;  %s241_s0 = scalar_lea.vmem %s137_s27, 512 }
   0xe   :  { %180 = vmatprep.subr.mxu0 %v28_v6  ;;  %212 = vmatprep.subr.mxu1 %v28_v6  ;;  %p242_p0 = scmp.ne.s32.totalorder %s137_s27, %s241_s0  ;;  %p247_p2 = scmp.lt.s32.totalorder %s241_s0, %s241_s0 }
   0xf   :  { %181 = vmatpush3.msra.mxu0 %v28_v6  ;;  %228 = vmatpush3.msra.mxu1 %v28_v6 }
  0x10   :  { %182 = vmatprep.subr.mxu0 %v27_v7  ;;  %213 = vmatprep.subr.mxu1 %v27_v7  ;;  %p248_p3 = por %p247_p2, %p246_p1 }
  0x11   :  { %183 = vmatpush3.msra.mxu0 %v27_v7  ;;  %229 = vmatpush3.msra.mxu1 %v27_v7 }
  0x12   :  { %184 = vmatprep.subr.mxu0 %v26_v8  ;;  %214 = vmatprep.subr.mxu1 %v26_v8  ;;  %p249_p4 = pnand %p248_p3, %p242_p0 }
  0x13   :  { %185 = vmatpush3.msra.mxu0 %v26_v8  ;;  %230 = vmatpush3.msra.mxu1 %v26_v8 }
  0x14   :  { %186 = vmatprep.subr.mxu0 %v25_v9  ;;  %215 = vmatprep.subr.mxu1 %v25_v9 }
  0x15   :  { %187 = vmatpush3.msra.mxu0 %v25_v9  ;;  %231 = vmatpush3.msra.mxu1 %v25_v9 }
  0x16   :  { %188 = vmatprep.subr.mxu0 %v24_v10  ;;  %216 = vmatprep.subr.mxu1 %v24_v10 }
  0x17   :  { %189 = vmatpush3.msra.mxu0 %v24_v10  ;;  %232 = vmatpush3.msra.mxu1 %v24_v10 }
  0x18   :  { %190 = vmatprep.subr.mxu0 %v23_v11  ;;  %217 = vmatprep.subr.mxu1 %v23_v11 }
  0x19   :  { %191 = vmatpush3.msra.mxu0 %v23_v11  ;;  %233 = vmatpush3.msra.mxu1 %v23_v11 }
  0x1a   :  { %192 = vmatprep.subr.mxu0 %v22_v12  ;;  %218 = vmatprep.subr.mxu1 %v22_v12 }
  0x1b   :  { %193 = vmatpush3.msra.mxu0 %v22_v12  ;;  %234 = vmatpush3.msra.mxu1 %v22_v12 }
  0x1c   :  { %194 = vmatprep.subr.mxu0 %v21_v13  ;;  %219 = vmatprep.subr.mxu1 %v21_v13 }
  0x1d   :  { %195 = vmatpush3.msra.mxu0 %v21_v13  ;;  %235 = vmatpush3.msra.mxu1 %v21_v13 }
  0x1e   :  { %196 = vmatprep.subr.mxu0 %v20_v14  ;;  %220 = vmatprep.subr.mxu1 %v20_v14 }
  0x1f   :  { %197 = vmatpush3.msra.mxu0 %v20_v14  ;;  %236 = vmatpush3.msra.mxu1 %v20_v14 }
  0x20   :  { %198 = vmatprep.subr.mxu0 %v19_v15  ;;  %221 = vmatprep.subr.mxu1 %v19_v15 }
  0x21   :  { %199 = vmatpush3.msra.mxu0 %v19_v15  ;;  %237 = vmatpush3.msra.mxu1 %v19_v15 }
  0x22   :  { %200 = vmatprep.mubr.f32.mxu0 %v15_v16  ;;  %203 = vmatprep.mubr.f32.mxu1 %v17_v17 }
  0x23   :  { %201 = vmatmul.mubr.f32.vlgmr.msra.gmra.mxu0 %v16_v18  ;;  %204 = vmatmul.mubr.f32.vlgmr.msra.gmra.mxu1 %v18_v19 }
  0xe3   :  { %v202_v21 = vpop.f32.mrf.mxu0  ;;  %v205_v22 = vpop.f32.mrf.mxu1 }
  0xe4   :  { %v114_v23 = vadd.f32 %v202_v21, %v147_v20  ;;  %v124_v24 = vadd.f32 %v205_v22, %v147_v20 }
  0xe5   :  { %v108_v25 = vpop.f32.mrf.mxu0  ;;  %v118_v26 = vpop.f32.mrf.mxu1 }
  0xe6   :  { %128 = vst [vmem:[#allocation2 + $0x8] sm:$0xff] %v114_v23  ;;  %130 = vst [vmem:[#allocation2 + $0x18] sm:$0xff] %v124_v24  ;;  %v109_v27 = vadd.f32 %v147_v20, %v108_v25  ;;  %v119_v28 = vadd.f32 %v147_v20, %v118_v26 }
  0xe8   :  { %127 = vst [vmem:[#allocation2] sm:$0xff] %v109_v27  ;;  %129 = vst [vmem:[#allocation2 + $0x10] sm:$0xff] %v119_v28 }
  0xe9   :  { %252 = shalt.err (!%p249_p4)
}
  0xea   :  { %s264_s2 = smov 128   ;;  %s265_s28 = smov 8  }
  0xeb   :  { %142 = dma.vmem_to_hbm [thread:$0]  %s137_s27, 512, %s355_s3, [#allocation3], %s264_s2, %s264_s2, %s265_s28  }
  0xec   :  { %261 = dma.done.wait [#allocation3], 512  }
  0xed   :  { %262 = vsyncadd [#allocation3], 4294966784 }
  0xee   :  { %146 = vsyncpa [#allocation3], 1 }

// kernel: generative_decoder_forward.3
= control target key start
LH: loop header
LB: loop body
LE: loop exit
PB: predicated region body
PF: predicated region fallthrough
CT: control target
= control target key end

     0   :  { %v364_v3 = vmov 0.0   ;;  %vm60_vm0 = vcmask 261120   ;;  %v40_v25 = vlaneseq  ;;  %s628_s1 = inlined_call_operand.vmem [shape: f32[32,512], index: 1, kind: input, shape index: {}]   ;;  %s629_s0 = inlined_call_operand.vmem [shape: f32[64,32], index: 0, kind: input, shape index: {}]   ;;  %s630_s2 = inlined_call_operand.vmem [shape: f32[1,512], index: 2, kind: input, shape index: {}]   ;;  %s631_s3 = inlined_call_operand.vmem [shape: f32[64,512], index: 3, kind: output, shape index: {}]  }
   0x1   :  { %v35_v0 = vld [vmem:[%s628_s1 + $0x68] sm:$0xff]  ;;  %v37_v1 = vld [vmem:[%s628_s1 + $0x78] sm:$0xff]  ;;  %v34_v2 = vld [vmem:[%s628_s1 + $0x60] sm:$0xff]  ;;  %149 = vmatprep.mubr.f32.mxu0 %v364_v3  ;;  %262 = vmatprep.mubr.f32.mxu1 %v364_v3 }
   0x2   :  { %109 = vmatprep.subr.mxu0 %v35_v0  ;;  %222 = vmatprep.subr.mxu1 %v37_v1  ;;  %v36_v4 = vld [vmem:[%s628_s1 + $0x70] sm:$0xff]  ;;  %v31_v5 = vld [vmem:[%s628_s1 + $0x48] sm:$0xff]  ;;  %v33_v6 = vld [vmem:[%s628_s1 + $0x58] sm:$0xff]  ;;  %v41_v26 = vshrl.u32 %v40_v25, 7 }
   0x3   :  { %110 = vmatpush1.msra.mxu0 %v34_v2  ;;  %223 = vmatpush1.msra.mxu1 %v36_v4  ;;  %v30_v7 = vld [vmem:[%s628_s1 + $0x40] sm:$0xff]  ;;  %v32_v8 = vld [vmem:[%s628_s1 + $0x50] sm:$0xff]  ;;  %v27_v9 = vld [vmem:[%s628_s1 + $0x28] sm:$0xff] }
   0x4   :  { %111 = vmatprep.subr.mxu0 %v31_v5  ;;  %224 = vmatprep.subr.mxu1 %v33_v6  ;;  %v29_v10 = vld [vmem:[%s628_s1 + $0x38] sm:$0xff]  ;;  %v26_v11 = vld [vmem:[%s628_s1 + $0x20] sm:$0xff]  ;;  %v28_v12 = vld [vmem:[%s628_s1 + $0x30] sm:$0xff]  ;;  %v42_v27 = vsub.s32 0, %v41_v26  ;;  %v50_v28 = vsub.s32 2, %v41_v26  ;;  %v46_v30 = vsub.s32 1, %v41_v26 }
   0x5   :  { %112 = vmatpush1.msra.mxu0 %v30_v7  ;;  %225 = vmatpush1.msra.mxu1 %v32_v8  ;;  %v23_v13 = vld [vmem:[%s628_s1 + $0x8] sm:$0xff]  ;;  %v25_v14 = vld [vmem:[%s628_s1 + $0x18] sm:$0xff]  ;;  %v22_v15 = vld [vmem:[%s628_s1] sm:$0xff]  ;;  %v54_v31 = vsub.s32 3, %v41_v26 }
   0x6   :  { %113 = vmatprep.subr.mxu0 %v27_v9  ;;  %226 = vmatprep.subr.mxu1 %v29_v10  ;;  %v24_v16 = vld [vmem:[%s628_s1 + $0x10] sm:$0xff]  ;;  %v14_v17 = vld [vmem:[%s629_s0] sm:$0xff]  ;;  %v15_v18 = vld [vmem:[%s629_s0 + $0x8] sm:$0xff] }
   0x7   :  { %114 = vmatpush1.msra.mxu0 %v26_v11  ;;  %227 = vmatpush1.msra.mxu1 %v28_v12  ;;  %v16_v19 = vld [vmem:[%s629_s0 + $0x10] sm:$0xff]  ;;  %v17_v20 = vld [vmem:[%s629_s0 + $0x18] sm:$0xff]  ;;  %v18_v21 = vld [vmem:[%s629_s0 + $0x20] sm:$0xff] }
   0x8   :  { %115 = vmatprep.subr.mxu0 %v23_v13  ;;  %228 = vmatprep.subr.mxu1 %v25_v14  ;;  %v19_v22 = vld [vmem:[%s629_s0 + $0x28] sm:$0xff]  ;;  %v20_v23 = vld [vmem:[%s629_s0 + $0x30] sm:$0xff]  ;;  %v21_v24 = vld [vmem:[%s629_s0 + $0x38] sm:$0xff] }
   0x9   :  { %116 = vmatpush1.msra.mxu0 %v22_v15  ;;  %229 = vmatpush1.msra.mxu1 %v24_v16  ;;  %v38_v29 = vld [vmem:[%s630_s2] sm:$0xf] }
   0xa   :  { %347 = vmatmul.mubr.msk.f32.vlgmr.msra.gmra.mxu0 %vm60_vm0, %v14_v17  ;;  %355 = vmatmul.mubr.msk.f32.vlgmr.msra.gmra.mxu1 %vm60_vm0, %v14_v17  ;;  %v492_v32 = vrot.slane %v38_v29, %v42_v27  ;;  %v494_v33 = vrot.slane %v38_v29, %v50_v28  ;;  %v496_v34 = vrot.slane %v38_v29, %v46_v30 }
   0xb   :  { %155 = vmatprep.mubr.f32.mxu0 %v364_v3  ;;  %268 = vmatprep.mubr.f32.mxu1 %v364_v3  ;;  %v498_v35 = vrot.slane %v38_v29, %v54_v31 }
   0xe   :  { %348 = vmatmul.mubr.msk.f32.gmra.mxu0 %vm60_vm0, %v15_v18  ;;  %356 = vmatmul.mubr.msk.f32.gmra.mxu1 %vm60_vm0, %v15_v18 }
   0xf   :  { %161 = vmatprep.mubr.f32.mxu0 %v364_v3  ;;  %274 = vmatprep.mubr.f32.mxu1 %v364_v3 }
  0x12   :  { %349 = vmatmul.mubr.msk.f32.gmra.mxu0 %vm60_vm0, %v16_v19  ;;  %357 = vmatmul.mubr.msk.f32.gmra.mxu1 %vm60_vm0, %v16_v19 }
  0x13   :  { %167 = vmatprep.mubr.f32.mxu0 %v364_v3  ;;  %280 = vmatprep.mubr.f32.mxu1 %v364_v3 }
  0x16   :  { %350 = vmatmul.mubr.msk.f32.gmra.mxu0 %vm60_vm0, %v17_v20  ;;  %358 = vmatmul.mubr.msk.f32.gmra.mxu1 %vm60_vm0, %v17_v20 }
  0x17   :  { %173 = vmatprep.mubr.f32.mxu0 %v364_v3  ;;  %286 = vmatprep.mubr.f32.mxu1 %v364_v3 }
  0x1a   :  { %351 = vmatmul.mubr.msk.f32.gmra.mxu0 %vm60_vm0, %v18_v21  ;;  %359 = vmatmul.mubr.msk.f32.gmra.mxu1 %vm60_vm0, %v18_v21 }
  0x1b   :  { %179 = vmatprep.mubr.f32.mxu0 %v364_v3  ;;  %292 = vmatprep.mubr.f32.mxu1 %v364_v3 }
  0x1e   :  { %352 = vmatmul.mubr.msk.f32.gmra.mxu0 %vm60_vm0, %v19_v22  ;;  %360 = vmatmul.mubr.msk.f32.gmra.mxu1 %vm60_vm0, %v19_v22 }
  0x1f   :  { %185 = vmatprep.mubr.f32.mxu0 %v364_v3  ;;  %298 = vmatprep.mubr.f32.mxu1 %v364_v3 }
  0x22   :  { %353 = vmatmul.mubr.msk.f32.gmra.mxu0 %vm60_vm0, %v20_v23  ;;  %361 = vmatmul.mubr.msk.f32.gmra.mxu1 %vm60_vm0, %v20_v23 }
  0x23   :  { %191 = vmatprep.mubr.f32.mxu0 %v364_v3  ;;  %304 = vmatprep.mubr.f32.mxu1 %v364_v3 }
  0x26   :  { %354 = vmatmul.mubr.msk.f32.gmra.mxu0 %vm60_vm0, %v21_v24  ;;  %362 = vmatmul.mubr.msk.f32.gmra.mxu1 %vm60_vm0, %v21_v24 }
  0xca   :  { %v151_v36 = vpop.f32.mrf.mxu0  ;;  %v264_v37 = vpop.f32.mrf.mxu1 }
  0xcb   :  { %v152_v38 = vadd.f32 %v151_v36, %v492_v32  ;;  %v265_v39 = vadd.f32 %v264_v37, %v494_v33 }
  0xcc   :  { %v153_v40 = vpop.f32.mrf.mxu0  ;;  %v266_v41 = vpop.f32.mrf.mxu1 }
  0xcd   :  { %311 = vst [vmem:[%s631_s3] sm:$0xff] %v152_v38  ;;  %313 = vst [vmem:[%s631_s3 + $0x10] sm:$0xff] %v265_v39  ;;  %v154_v42 = vadd.f32 %v153_v40, %v496_v34  ;;  %v267_v43 = vadd.f32 %v266_v41, %v498_v35 }
  0xce   :  { %v157_v44 = vpop.f32.mrf.mxu0  ;;  %v270_v45 = vpop.f32.mrf.mxu1 }
  0xcf   :  { %312 = vst [vmem:[%s631_s3 + $0x8] sm:$0xff] %v154_v42  ;;  %314 = vst [vmem:[%s631_s3 + $0x18] sm:$0xff] %v267_v43  ;;  %v158_v46 = vadd.f32 %v157_v44, %v492_v32  ;;  %v271_v47 = vadd.f32 %v270_v45, %v494_v33 }
  0xd0   :  { %v159_v48 = vpop.f32.mrf.mxu0  ;;  %v272_v49 = vpop.f32.mrf.mxu1 }
  0xd1   :  { %315 = vst [vmem:[%s631_s3 + $0x20] sm:$0xff] %v158_v46  ;;  %317 = vst [vmem:[%s631_s3 + $0x30] sm:$0xff] %v271_v47  ;;  %v160_v50 = vadd.f32 %v159_v48, %v496_v34  ;;  %v273_v51 = vadd.f32 %v272_v49, %v498_v35 }
  0xd2   :  { %v163_v52 = vpop.f32.mrf.mxu0  ;;  %v276_v53 = vpop.f32.mrf.mxu1 }
  0xd3   :  { %316 = vst [vmem:[%s631_s3 + $0x28] sm:$0xff] %v160_v50  ;;  %318 = vst [vmem:[%s631_s3 + $0x38] sm:$0xff] %v273_v51  ;;  %v164_v54 = vadd.f32 %v163_v52, %v492_v32  ;;  %v277_v55 = vadd.f32 %v276_v53, %v494_v33 }
  0xd4   :  { %v165_v56 = vpop.f32.mrf.mxu0  ;;  %v278_v57 = vpop.f32.mrf.mxu1 }
  0xd5   :  { %319 = vst [vmem:[%s631_s3 + $0x40] sm:$0xff] %v164_v54  ;;  %321 = vst [vmem:[%s631_s3 + $0x50] sm:$0xff] %v277_v55  ;;  %v166_v58 = vadd.f32 %v165_v56, %v496_v34  ;;  %v279_v59 = vadd.f32 %v278_v57, %v498_v35 }
  0xd6   :  { %v169_v60 = vpop.f32.mrf.mxu0  ;;  %v282_v61 = vpop.f32.mrf.mxu1 }
  0xd7   :  { %320 = vst [vmem:[%s631_s3 + $0x48] sm:$0xff] %v166_v58  ;;  %322 = vst [vmem:[%s631_s3 + $0x58] sm:$0xff] %v279_v59  ;;  %v170_v62 = vadd.f32 %v169_v60, %v492_v32  ;;  %v283_v63 = vadd.f32 %v282_v61, %v494_v33 }
  0xd8   :  { %v171_v0 = vpop.f32.mrf.mxu0  ;;  %v284_v1 = vpop.f32.mrf.mxu1 }
  0xd9   :  { %323 = vst [vmem:[%s631_s3 + $0x60] sm:$0xff] %v170_v62  ;;  %325 = vst [vmem:[%s631_s3 + $0x70] sm:$0xff] %v283_v63  ;;  %v172_v2 = vadd.f32 %v171_v0, %v496_v34  ;;  %v285_v3 = vadd.f32 %v284_v1, %v498_v35 }
  0xda   :  { %v175_v4 = vpop.f32.mrf.mxu0  ;;  %v288_v5 = vpop.f32.mrf.mxu1 }
  0xdb   :  { %324 = vst [vmem:[%s631_s3 + $0x68] sm:$0xff] %v172_v2  ;;  %326 = vst [vmem:[%s631_s3 + $0x78] sm:$0xff] %v285_v3  ;;  %v176_v6 = vadd.f32 %v175_v4, %v492_v32  ;;  %v289_v7 = vadd.f32 %v288_v5, %v494_v33 }
  0xdc   :  { %v177_v8 = vpop.f32.mrf.mxu0  ;;  %v290_v9 = vpop.f32.mrf.mxu1 }
  0xdd   :  { %327 = vst [vmem:[%s631_s3 + $0x80] sm:$0xff] %v176_v6  ;;  %329 = vst [vmem:[%s631_s3 + $0x90] sm:$0xff] %v289_v7  ;;  %v178_v10 = vadd.f32 %v177_v8, %v496_v34  ;;  %v291_v11 = vadd.f32 %v290_v9, %v498_v35 }
  0xde   :  { %v181_v12 = vpop.f32.mrf.mxu0  ;;  %v294_v13 = vpop.f32.mrf.mxu1 }
  0xdf   :  { %328 = vst [vmem:[%s631_s3 + $0x88] sm:$0xff] %v178_v10  ;;  %330 = vst [vmem:[%s631_s3 + $0x98] sm:$0xff] %v291_v11  ;;  %v182_v14 = vadd.f32 %v181_v12, %v492_v32  ;;  %v295_v15 = vadd.f32 %v294_v13, %v494_v33 }
  0xe0   :  { %v183_v16 = vpop.f32.mrf.mxu0  ;;  %v296_v17 = vpop.f32.mrf.mxu1 }
  0xe1   :  { %331 = vst [vmem:[%s631_s3 + $0xa0] sm:$0xff] %v182_v14  ;;  %333 = vst [vmem:[%s631_s3 + $0xb0] sm:$0xff] %v295_v15  ;;  %v184_v18 = vadd.f32 %v183_v16, %v496_v34  ;;  %v297_v19 = vadd.f32 %v296_v17, %v498_v35 }
  0xe2   :  { %v187_v20 = vpop.f32.mrf.mxu0  ;;  %v300_v21 = vpop.f32.mrf.mxu1 }
  0xe3   :  { %332 = vst [vmem:[%s631_s3 + $0xa8] sm:$0xff] %v184_v18  ;;  %334 = vst [vmem:[%s631_s3 + $0xb8] sm:$0xff] %v297_v19  ;;  %v188_v22 = vadd.f32 %v187_v20, %v492_v32  ;;  %v301_v23 = vadd.f32 %v300_v21, %v494_v33 }
  0xe4   :  { %v189_v24 = vpop.f32.mrf.mxu0  ;;  %v302_v25 = vpop.f32.mrf.mxu1 }
  0xe5   :  { %335 = vst [vmem:[%s631_s3 + $0xc0] sm:$0xff] %v188_v22  ;;  %337 = vst [vmem:[%s631_s3 + $0xd0] sm:$0xff] %v301_v23  ;;  %v190_v26 = vadd.f32 %v189_v24, %v496_v34  ;;  %v303_v27 = vadd.f32 %v302_v25, %v498_v35 }
  0xe6   :  { %v193_v28 = vpop.f32.mrf.mxu0  ;;  %v306_v29 = vpop.f32.mrf.mxu1 }
  0xe7   :  { %336 = vst [vmem:[%s631_s3 + $0xc8] sm:$0xff] %v190_v26  ;;  %338 = vst [vmem:[%s631_s3 + $0xd8] sm:$0xff] %v303_v27  ;;  %v194_v30 = vadd.f32 %v193_v28, %v492_v32  ;;  %v307_v31 = vadd.f32 %v306_v29, %v494_v33 }
  0xe8   :  { %v195_v36 = vpop.f32.mrf.mxu0  ;;  %v308_v37 = vpop.f32.mrf.mxu1 }
  0xe9   :  { %339 = vst [vmem:[%s631_s3 + $0xe0] sm:$0xff] %v194_v30  ;;  %341 = vst [vmem:[%s631_s3 + $0xf0] sm:$0xff] %v307_v31  ;;  %v196_v38 = vadd.f32 %v195_v36, %v496_v34  ;;  %v309_v39 = vadd.f32 %v308_v37, %v498_v35 }
  0xeb   :  { %340 = vst [vmem:[%s631_s3 + $0xe8] sm:$0xff] %v196_v38  ;;  %342 = vst [vmem:[%s631_s3 + $0xf8] sm:$0xff] %v309_v39 }

// kernel: generative_decoder_forward.4
= control target key start
LH: loop header
LB: loop body
LE: loop exit
PB: predicated region body
PF: predicated region fallthrough
CT: control target
= control target key end

     0   :  { %v3553_v3 = vmov 0.0   ;;  %s3549_s2 = inlined_call_operand.vmem [shape: f32[128,512], index: 2, kind: input, shape index: {}]   ;;  %s3550_s1 = inlined_call_operand.vmem [shape: f32[8,128], index: 1, kind: input, shape index: {}]   ;;  %s3551_s0 = inlined_call_operand.vmem [shape: f32[8,8,512], index: 0, kind: input, shape index: {}]   ;;  %s3552_s3 = inlined_call_operand.vmem [shape: f32[8,8,128], index: 3, kind: output, shape index: {}]  }
   0x1   :  { %v2195_v0 = vld [vmem:[%s3549_s2 + $0x1e8] sm:$0xff]  ;;  %v2200_v1 = vld [vmem:[%s3549_s2 + $0x1e0] sm:$0xff]  ;;  %155 = vmatprep.mubr.f32.mxu0 %v3553_v3  ;;  %226 = vmatprep.mubr.f32.mxu1 %v3553_v3  ;;  %v2242_v9 = vld [vmem:[%s3549_s2 + $0x1f8] sm:$0xff] }
   0x2   :  { %3623 = vst [vmem:[#allocation4_spill] sm:$0xff] %v2195_v0  ;;  %v2205_v2 = vld [vmem:[%s3549_s2 + $0x1c8] sm:$0xff]  ;;  %91 = vmatprep.subr.mxu0 %v2195_v0  ;;  %v2213_v4 = vld [vmem:[%s3549_s2 + $0x1c0] sm:$0xff]  ;;  %3624 = vst [vmem:[#allocation5_spill] sm:$0xff] %v2242_v9  ;;  %162 = vmatprep.subr.mxu1 %v2242_v9 }
   0x3   :  { %92 = vmatpush1.msra.mxu0 %v2200_v1  ;;  %v2219_v5 = vld [vmem:[%s3549_s2 + $0x1a8] sm:$0xff]  ;;  %v2225_v6 = vld [vmem:[%s3549_s2 + $0x1a0] sm:$0xff]  ;;  %v2254_v11 = vld [vmem:[%s3549_s2 + $0x1f0] sm:$0xff] }
   0x4   :  { %93 = vmatprep.subr.mxu0 %v2205_v2  ;;  %v2231_v7 = vld [vmem:[%s3549_s2 + $0x188] sm:$0xff]  ;;  %v2237_v8 = vld [vmem:[%s3549_s2 + $0x180] sm:$0xff]  ;;  %163 = vmatpush1.msra.mxu1 %v2254_v11  ;;  %v2266_v13 = vld [vmem:[%s3549_s2 + $0x1d8] sm:$0xff] }
   0x5   :  { %94 = vmatpush1.msra.mxu0 %v2213_v4  ;;  %v2248_v10 = vld [vmem:[%s3549_s2 + $0x168] sm:$0xff]  ;;  %v2260_v12 = vld [vmem:[%s3549_s2 + $0x160] sm:$0xff]  ;;  %v2271_v14 = vld [vmem:[%s3549_s2 + $0x1d0] sm:$0xff]  ;;  %164 = vmatprep.subr.mxu1 %v2266_v13 }
   0x6   :  { %95 = vmatprep.subr.mxu0 %v2219_v5  ;;  %v2277_v15 = vld [vmem:[%s3549_s2 + $0x148] sm:$0xff]  ;;  %v2283_v16 = vld [vmem:[%s3549_s2 + $0x1b8] sm:$0xff]  ;;  %v2289_v17 = vld [vmem:[%s3549_s2 + $0x140] sm:$0xff]  ;;  %165 = vmatpush1.msra.mxu1 %v2271_v14 }
   0x7   :  { %96 = vmatpush1.msra.mxu0 %v2225_v6  ;;  %v2295_v18 = vld [vmem:[%s3549_s2 + $0x1b0] sm:$0xff]  ;;  %v2300_v19 = vld [vmem:[%s3549_s2 + $0x198] sm:$0xff]  ;;  %v2306_v20 = vld [vmem:[%s3549_s2 + $0x128] sm:$0xff]  ;;  %166 = vmatprep.subr.mxu1 %v2283_v16 }
   0x8   :  { %97 = vmatprep.subr.mxu0 %v2231_v7  ;;  %v2312_v21 = vld [vmem:[%s3549_s2 + $0x190] sm:$0xff]  ;;  %v2318_v22 = vld [vmem:[%s3549_s2 + $0x120] sm:$0xff]  ;;  %167 = vmatpush1.msra.mxu1 %v2295_v18  ;;  %v2324_v23 = vld [vmem:[%s3549_s2 + $0x178] sm:$0xff] }
   0x9   :  { %98 = vmatpush1.msra.mxu0 %v2237_v8  ;;  %v2330_v24 = vld [vmem:[%s3549_s2 + $0x108] sm:$0xff]  ;;  %168 = vmatprep.subr.mxu1 %v2300_v19  ;;  %v2336_v25 = vld [vmem:[%s3549_s2 + $0x170] sm:$0xff]  ;;  %v2342_v26 = vld [vmem:[%s3549_s2 + $0x100] sm:$0xff] }
   0xa   :  { %99 = vmatprep.subr.mxu0 %v2248_v10  ;;  %169 = vmatpush1.msra.mxu1 %v2312_v21  ;;  %v2348_v27 = vld [vmem:[%s3549_s2 + $0x158] sm:$0xff]  ;;  %v2354_v28 = vld [vmem:[%s3549_s2 + $0xe8] sm:$0xff]  ;;  %v2360_v29 = vld [vmem:[%s3549_s2 + $0x150] sm:$0xff] }
   0xb   :  { %100 = vmatpush1.msra.mxu0 %v2260_v12  ;;  %170 = vmatprep.subr.mxu1 %v2324_v23  ;;  %v2366_v30 = vld [vmem:[%s3549_s2 + $0xe0] sm:$0xff]  ;;  %v2372_v31 = vld [vmem:[%s3549_s2 + $0x138] sm:$0xff]  ;;  %v2378_v32 = vld [vmem:[%s3549_s2 + $0xc8] sm:$0xff] }
   0xc   :  { %101 = vmatprep.subr.mxu0 %v2277_v15  ;;  %171 = vmatpush1.msra.mxu1 %v2336_v25  ;;  %v2384_v33 = vld [vmem:[%s3549_s2 + $0x130] sm:$0xff]  ;;  %v2390_v34 = vld [vmem:[%s3549_s2 + $0xc0] sm:$0xff]  ;;  %v2396_v35 = vld [vmem:[%s3549_s2 + $0x118] sm:$0xff] }
   0xd   :  { %102 = vmatpush1.msra.mxu0 %v2289_v17  ;;  %172 = vmatprep.subr.mxu1 %v2348_v27  ;;  %v2402_v36 = vld [vmem:[%s3549_s2 + $0xa8] sm:$0xff]  ;;  %v2408_v37 = vld [vmem:[%s3549_s2 + $0x110] sm:$0xff]  ;;  %v2414_v38 = vld [vmem:[%s3549_s2 + $0xa0] sm:$0xff] }
   0xe   :  { %103 = vmatprep.subr.mxu0 %v2306_v20  ;;  %173 = vmatpush1.msra.mxu1 %v2360_v29  ;;  %v2420_v39 = vld [vmem:[%s3549_s2 + $0xf8] sm:$0xff]  ;;  %v2426_v40 = vld [vmem:[%s3549_s2 + $0x88] sm:$0xff]  ;;  %v2432_v41 = vld [vmem:[%s3549_s2 + $0xf0] sm:$0xff] }
   0xf   :  { %104 = vmatpush1.msra.mxu0 %v2318_v22  ;;  %174 = vmatprep.subr.mxu1 %v2372_v31  ;;  %v2438_v42 = vld [vmem:[%s3549_s2 + $0x80] sm:$0xff]  ;;  %v2444_v43 = vld [vmem:[%s3549_s2 + $0xd8] sm:$0xff]  ;;  %v2450_v44 = vld [vmem:[%s3549_s2 + $0x68] sm:$0xff] }
  0x10   :  { %105 = vmatprep.subr.mxu0 %v2330_v24  ;;  %175 = vmatpush1.msra.mxu1 %v2384_v33  ;;  %3625 = vst [vmem:[#allocation6_spill] sm:$0xff] %v2450_v44  ;;  %v2456_v45 = vld [vmem:[%s3549_s2 + $0xd0] sm:$0xff]  ;;  %v2462_v46 = vld [vmem:[%s3549_s2 + $0x60] sm:$0xff]  ;;  %v2468_v47 = vld [vmem:[%s3549_s2 + $0xb8] sm:$0xff] }
  0x11   :  { %106 = vmatpush1.msra.mxu0 %v2342_v26  ;;  %176 = vmatprep.subr.mxu1 %v2396_v35  ;;  %3626 = vst [vmem:[#allocation7_spill] sm:$0xff] %v2462_v46  ;;  %v2474_v48 = vld [vmem:[%s3549_s2 + $0x48] sm:$0xff]  ;;  %v2480_v49 = vld [vmem:[%s3549_s2 + $0xb0] sm:$0xff]  ;;  %v2486_v50 = vld [vmem:[%s3549_s2 + $0x40] sm:$0xff] }
  0x12   :  { %107 = vmatprep.subr.mxu0 %v2354_v28  ;;  %177 = vmatpush1.msra.mxu1 %v2408_v37  ;;  %3627 = vst [vmem:[#allocation8_spill] sm:$0xff] %v2474_v48  ;;  %3628 = vst [vmem:[#allocation9_spill] sm:$0xff] %v2486_v50  ;;  %v2492_v51 = vld [vmem:[%s3549_s2 + $0x98] sm:$0xff]  ;;  %v2498_v52 = vld [vmem:[%s3549_s2 + $0x28] sm:$0xff] }
  0x13   :  { %108 = vmatpush1.msra.mxu0 %v2366_v30  ;;  %178 = vmatprep.subr.mxu1 %v2420_v39  ;;  %3629 = vst [vmem:[#allocation10_spill] sm:$0xff] %v2498_v52  ;;  %v2504_v53 = vld [vmem:[%s3549_s2 + $0x90] sm:$0xff]  ;;  %v2510_v54 = vld [vmem:[%s3549_s2 + $0x20] sm:$0xff]  ;;  %v2516_v55 = vld [vmem:[%s3549_s2 + $0x78] sm:$0xff] }
  0x14   :  { %109 = vmatprep.subr.mxu0 %v2378_v32  ;;  %179 = vmatpush1.msra.mxu1 %v2432_v41  ;;  %3630 = vst [vmem:[#allocation11_spill] sm:$0xff] %v2504_v53  ;;  %3631 = vst [vmem:[#allocation12_spill] sm:$0xff] %v2510_v54  ;;  %v2522_v56 = vld [vmem:[%s3549_s2 + $0x8] sm:$0xff]  ;;  %v2528_v57 = vld [vmem:[%s3549_s2 + $0x70] sm:$0xff] }
  0x15   :  { %110 = vmatpush1.msra.mxu0 %v2390_v34  ;;  %180 = vmatprep.subr.mxu1 %v2444_v43  ;;  %3632 = vst [vmem:[#allocation13_spill] sm:$0xff] %v2516_v55  ;;  %3633 = vst [vmem:[#allocation14_spill] sm:$0xff] %v2522_v56  ;;  %v2534_v58 = vld [vmem:[%s3549_s2] sm:$0xff]  ;;  %v2540_v59 = vld [vmem:[%s3549_s2 + $0x58] sm:$0xff] }
  0x16   :  { %111 = vmatprep.subr.mxu0 %v2402_v36  ;;  %181 = vmatpush1.msra.mxu1 %v2456_v45  ;;  %3634 = vst [vmem:[#allocation15_spill] sm:$0xff] %v2528_v57  ;;  %3635 = vst [vmem:[#allocation16_spill] sm:$0xff] %v2534_v58  ;;  %v18_v60 = vld [vmem:[%s3550_s1] sm:$0xff]  ;;  %v2550_v61 = vld [vmem:[%s3549_s2 + $0x50] sm:$0xff] }
  0x17   :  { %112 = vmatpush1.msra.mxu0 %v2414_v38  ;;  %182 = vmatprep.subr.mxu1 %v2468_v47  ;;  %3636 = vst [vmem:[#allocation17_spill] sm:$0xff] %v2540_v59  ;;  %3637 = vst [vmem:[#allocation18_spill] sm:$0xff] %v2550_v61  ;;  %v2557_v62 = vld [vmem:[%s3549_s2 + $0x38] sm:$0xff]  ;;  %v2564_v63 = vld [vmem:[%s3549_s2 + $0x30] sm:$0xff] }
  0x18   :  { %113 = vmatprep.subr.mxu0 %v2426_v40  ;;  %183 = vmatpush1.msra.mxu1 %v2480_v49  ;;  %3638 = vst [vmem:[#allocation19_spill] sm:$0xff] %v2557_v62  ;;  %3639 = vst [vmem:[#allocation20_spill] sm:$0xff] %v2564_v63  ;;  %v2570_v3 = vld [vmem:[%s3549_s2 + $0x18] sm:$0xff] }
  0x19   :  { %114 = vmatpush1.msra.mxu0 %v2438_v42  ;;  %184 = vmatprep.subr.mxu1 %v2492_v51  ;;  %3640 = vst [vmem:[#allocation21_spill] sm:$0xff] %v2570_v3 }
  0x1a   :  { %115 = vmatprep.subr.mxu0 %v2450_v44  ;;  %185 = vmatpush1.msra.mxu1 %v2504_v53 }
  0x1b   :  { %116 = vmatpush1.msra.mxu0 %v2462_v46  ;;  %186 = vmatprep.subr.mxu1 %v2516_v55 }
  0x1c   :  { %117 = vmatprep.subr.mxu0 %v2474_v48  ;;  %187 = vmatpush1.msra.mxu1 %v2528_v57 }
  0x1d   :  { %118 = vmatpush1.msra.mxu0 %v2486_v50  ;;  %188 = vmatprep.subr.mxu1 %v2540_v59 }
  0x1e   :  { %119 = vmatprep.subr.mxu0 %v2498_v52  ;;  %189 = vmatpush1.msra.mxu1 %v2550_v61 }
  0x1f   :  { %120 = vmatpush1.msra.mxu0 %v2510_v54  ;;  %190 = vmatprep.subr.mxu1 %v2557_v62 }
  0x20   :  { %121 = vmatprep.subr.mxu0 %v2522_v56  ;;  %191 = vmatpush1.msra.mxu1 %v2564_v63 }
  0x21   :  { %122 = vmatpush1.msra.mxu0 %v2534_v58  ;;  %v2576_v58 = vld [vmem:[%s3549_s2 + $0x10] sm:$0xff]  ;;  %192 = vmatprep.subr.mxu1 %v2570_v3 }
  0x22   :  { %156 = vmatmul.mubr.f32.vlgmr.msra.gmra.mxu0 %v18_v60  ;;  %3641 = vst [vmem:[#allocation22_spill] sm:$0xff] %v2576_v58  ;;  %335 = vmatprep.subr.mxu0 %v2195_v0 }
  0x23   :  { %336 = vmatpush1.msra.mxu0 %v2200_v1  ;;  %193 = vmatpush1.msra.mxu1 %v2576_v58 }
  0x24   :  { %337 = vmatprep.subr.mxu0 %v2205_v2  ;;  %227 = vmatmul.mubr.f32.vlgmr.msra.gmra.mxu1 %v18_v60  ;;  %v3642_v60 = vld [vmem:[#allocation16_spill] sm:$0xff] }
  0x25   :  { %338 = vmatpush1.msra.mxu0 %v2213_v4  ;;  %406 = vmatprep.subr.mxu1 %v2242_v9 }
  0x26   :  { %407 = vmatpush1.msra.mxu1 %v2254_v11  ;;  %339 = vmatprep.subr.mxu0 %v2219_v5 }
  0x27   :  { %408 = vmatprep.subr.mxu1 %v2266_v13  ;;  %340 = vmatpush1.msra.mxu0 %v2225_v6 }
  0x28   :  { %409 = vmatpush1.msra.mxu1 %v2271_v14  ;;  %341 = vmatprep.subr.mxu0 %v2231_v7 }
  0x29   :  { %410 = vmatprep.subr.mxu1 %v2283_v16  ;;  %342 = vmatpush1.msra.mxu0 %v2237_v8 }
  0x2a   :  { %411 = vmatpush1.msra.mxu1 %v2295_v18  ;;  %343 = vmatprep.subr.mxu0 %v2248_v10 }
  0x2b   :  { %412 = vmatprep.subr.mxu1 %v2300_v19  ;;  %344 = vmatpush1.msra.mxu0 %v2260_v12 }
  0x2c   :  { %413 = vmatpush1.msra.mxu1 %v2312_v21  ;;  %345 = vmatprep.subr.mxu0 %v2277_v15 }
  0x2d   :  { %414 = vmatprep.subr.mxu1 %v2324_v23  ;;  %346 = vmatpush1.msra.mxu0 %v2289_v17 }
  0x2e   :  { %415 = vmatpush1.msra.mxu1 %v2336_v25  ;;  %347 = vmatprep.subr.mxu0 %v2306_v20 }
  0x2f   :  { %416 = vmatprep.subr.mxu1 %v2348_v27  ;;  %348 = vmatpush1.msra.mxu0 %v2318_v22 }
  0x30   :  { %417 = vmatpush1.msra.mxu1 %v2360_v29  ;;  %349 = vmatprep.subr.mxu0 %v2330_v24 }
  0x31   :  { %418 = vmatprep.subr.mxu1 %v2372_v31  ;;  %350 = vmatpush1.msra.mxu0 %v2342_v26 }
  0x32   :  { %419 = vmatpush1.msra.mxu1 %v2384_v33  ;;  %351 = vmatprep.subr.mxu0 %v2354_v28 }
  0x33   :  { %420 = vmatprep.subr.mxu1 %v2396_v35  ;;  %352 = vmatpush1.msra.mxu0 %v2366_v30 }
  0x34   :  { %421 = vmatpush1.msra.mxu1 %v2408_v37  ;;  %353 = vmatprep.subr.mxu0 %v2378_v32 }
  0x35   :  { %422 = vmatprep.subr.mxu1 %v2420_v39  ;;  %354 = vmatpush1.msra.mxu0 %v2390_v34 }
  0x36   :  { %423 = vmatpush1.msra.mxu1 %v2432_v41  ;;  %355 = vmatprep.subr.mxu0 %v2402_v36 }
  0x37   :  { %424 = vmatprep.subr.mxu1 %v2444_v43  ;;  %356 = vmatpush1.msra.mxu0 %v2414_v38 }
  0x38   :  { %425 = vmatpush1.msra.mxu1 %v2456_v45  ;;  %357 = vmatprep.subr.mxu0 %v2426_v40 }
  0x39   :  { %426 = vmatprep.subr.mxu1 %v2468_v47  ;;  %358 = vmatpush1.msra.mxu0 %v2438_v42 }
  0x3a   :  { %427 = vmatpush1.msra.mxu1 %v2480_v49  ;;  %359 = vmatprep.subr.mxu0 %v2450_v44 }
  0x3b   :  { %428 = vmatprep.subr.mxu1 %v2492_v51  ;;  %360 = vmatpush1.msra.mxu0 %v2462_v46 }
  0x3c   :  { %429 = vmatpush1.msra.mxu1 %v2504_v53  ;;  %361 = vmatprep.subr.mxu0 %v2474_v48  ;;  %v3643_v48 = vmov 0.0  }
  0x3d   :  { %430 = vmatprep.subr.mxu1 %v2516_v55  ;;  %362 = vmatpush1.msra.mxu0 %v2486_v50 }
  0x3e   :  { %431 = vmatpush1.msra.mxu1 %v2528_v57  ;;  %363 = vmatprep.subr.mxu0 %v2498_v52 }
  0x3f   :  { %432 = vmatprep.subr.mxu1 %v2540_v59  ;;  %364 = vmatpush1.msra.mxu0 %v2510_v54 }
  0x40   :  { %433 = vmatpush1.msra.mxu1 %v2550_v61  ;;  %365 = vmatprep.subr.mxu0 %v2522_v56  ;;  %v23_v56 = vld [vmem:[%s3551_s0] sm:$0xff]  ;;  %v25_v61 = vld [vmem:[%s3551_s0 + $0x10] sm:$0xff] }
  0x41   :  { %434 = vmatprep.subr.mxu1 %v2557_v62  ;;  %366 = vmatpush1.msra.mxu0 %v3642_v60  ;;  %v24_v60 = vld [vmem:[%s3551_s0 + $0x8] sm:$0xff] }
  0x42   :  { %435 = vmatpush1.msra.mxu1 %v2564_v63  ;;  %399 = vmatprep.mubr.f32.mxu0 %v3643_v48 }
  0x43   :  { %436 = vmatprep.subr.mxu1 %v2570_v3  ;;  %470 = vmatprep.mubr.f32.mxu1 %v3643_v48 }
  0x44   :  { %437 = vmatpush1.msra.mxu1 %v2576_v58  ;;  %580 = vmatprep.subr.mxu0 %v2195_v0 }
  0x45   :  { %651 = vmatprep.subr.mxu1 %v2242_v9  ;;  %v26_v9 = vld [vmem:[%s3551_s0 + $0x18] sm:$0xff] }
  0xe2   :  { %v157_v54 = vpop.f32.mrf.mxu0 }
  0xe3   :  { %v233_v63 = vadd.f32 %v157_v54, %v23_v56 }
  0xe4   :  { %v159_v62 = vpop.f32.mrf.mxu0  ;;  %v228_v58 = vpop.f32.mrf.mxu1 }
  0xe5   :  { %v1983_v3 = vmul.f32 -1.442695, %v233_v63  ;;  %v234_v52 = vadd.f32 %v159_v62, %v24_v60  ;;  %v235_v59 = vadd.f32 %v228_v58, %v25_v61  ;;  %v3661_v58 = vld [vmem:[#allocation22_spill] sm:$0xff]  ;;  %v3663_v61 = vld [vmem:[#allocation5_spill] sm:$0xff] }
  0xe6   :  { %v230_v0 = vpop.f32.mrf.mxu1 }
  0xe7   :  { %2043 = vpow2.f32 %v1983_v3  ;;  %v1984_v48 = vmul.f32 -1.442695, %v234_v52  ;;  %v236_v50 = vadd.f32 %v230_v0, %v26_v9 }
  0xe9   :  { %2045 = vpow2.f32 %v1984_v48  ;;  %v1985_v57 = vmul.f32 -1.442695, %v236_v50 }
  0xea   :  { %2047 = vtanh.f32 %v235_v59  ;;  %v3662_v59 = vld [vmem:[#allocation4_spill] sm:$0xff] }
  0xeb   :  { %2049 = vpow2.f32 %v1985_v57  ;;  %v3660_v57 = vmov 0.0  }
  0xf4   :  { %v2044_v54 = vpop.eup %2043 }
  0xf5   :  { %v240_v56 = vadd.f32 1.0, %v2044_v54  ;;  %v1986_v54 = vld [vmem:[%s3551_s0 + $0x20] sm:$0xff] }
  0xf6   :  { %v2046_v62 = vpop.eup %2045 }
  0xf7   :  { %2051 = vrcp.f32 %v240_v56  ;;  %v246_v3 = vadd.f32 1.0, %v2046_v62  ;;  %v2048_v48 = vpop.eup %2047  ;;  %v1987_v62 = vld [vmem:[%s3551_s0 + $0x28] sm:$0xff] }
  0xf8   :  { %v2050_v52 = vpop.eup %2049 }
  0xf9   :  { %2053 = vrcp.f32 %v246_v3  ;;  %v253_v46 = vadd.f32 1.0, %v2050_v52 }
  0xfb   :  { %2055 = vrcp.f32 %v253_v46  ;;  %v3658_v46 = vld [vmem:[#allocation21_spill] sm:$0xff] }
 0x104   :  { %v2052_v63 = vpop.eup %2051 }
 0x105   :  { %v257_v44 = vmul.f32 %v2052_v63, %v2048_v48 }
 0x106   :  { %v2054_v60 = vpop.eup %2053 }
 0x107   :  { %v256_v55 = vmul.f32 0.0, %v2054_v60 }
 0x108   :  { %v2056_v0 = vpop.eup %2055 }
 0x109   :  { %v2661_v53 = vadd.f32 %v257_v44, %v256_v55  ;;  %v3657_v44 = vld [vmem:[#allocation14_spill] sm:$0xff]  ;;  %v3659_v55 = vld [vmem:[#allocation16_spill] sm:$0xff] }
 0x10b   :  { %2057 = vtanh.f32 %v2661_v53 }
 0x118   :  { %v2058_v9 = vpop.eup %2057 }
 0x119   :  { %v260_v50 = vmul.f32 %v2058_v9, %v2056_v0  ;;  %v1989_v9 = vld [vmem:[%s3551_s0 + $0x38] sm:$0xff] }
 0x11b   :  { %263 = vst [vmem:[%s3552_s3] sm:$0xff] %v260_v50  ;;  %400 = vmatmul.mubr.f32.vlgmr.msra.gmra.mxu0 %v260_v50  ;;  %471 = vmatmul.mubr.f32.vlgmr.msra.gmra.mxu1 %v260_v50 }
 0x11c   :  { %581 = vmatpush1.msra.mxu0 %v2200_v1  ;;  %652 = vmatpush1.msra.mxu1 %v2254_v11 }
 0x11d   :  { %582 = vmatprep.subr.mxu0 %v2205_v2  ;;  %653 = vmatprep.subr.mxu1 %v2266_v13 }
 0x11e   :  { %583 = vmatpush1.msra.mxu0 %v2213_v4  ;;  %654 = vmatpush1.msra.mxu1 %v2271_v14 }
 0x11f   :  { %584 = vmatprep.subr.mxu0 %v2219_v5  ;;  %655 = vmatprep.subr.mxu1 %v2283_v16 }
 0x120   :  { %585 = vmatpush1.msra.mxu0 %v2225_v6  ;;  %656 = vmatpush1.msra.mxu1 %v2295_v18 }
 0x121   :  { %586 = vmatprep.subr.mxu0 %v2231_v7  ;;  %657 = vmatprep.subr.mxu1 %v2300_v19 }
 0x122   :  { %587 = vmatpush1.msra.mxu0 %v2237_v8  ;;  %658 = vmatpush1.msra.mxu1 %v2312_v21 }
 0x123   :  { %588 = vmatprep.subr.mxu0 %v2248_v10  ;;  %659 = vmatprep.subr.mxu1 %v2324_v23 }
 0x124   :  { %589 = vmatpush1.msra.mxu0 %v2260_v12  ;;  %660 = vmatpush1.msra.mxu1 %v2336_v25 }
 0x125   :  { %590 = vmatprep.subr.mxu0 %v2277_v15  ;;  %661 = vmatprep.subr.mxu1 %v2348_v27 }
 0x126   :  { %591 = vmatpush1.msra.mxu0 %v2289_v17  ;;  %662 = vmatpush1.msra.mxu1 %v2360_v29  ;;  %v3644_v17 = vld [vmem:[#allocation11_spill] sm:$0xff] }
 0x127   :  { %592 = vmatprep.subr.mxu0 %v2306_v20  ;;  %663 = vmatprep.subr.mxu1 %v2372_v31  ;;  %v3645_v20 = vld [vmem:[#allocation6_spill] sm:$0xff] }
 0x128   :  { %593 = vmatpush1.msra.mxu0 %v2318_v22  ;;  %664 = vmatpush1.msra.mxu1 %v2384_v33  ;;  %v3646_v22 = vld [vmem:[#allocation13_spill] sm:$0xff] }
 0x129   :  { %594 = vmatprep.subr.mxu0 %v2330_v24  ;;  %665 = vmatprep.subr.mxu1 %v2396_v35  ;;  %v3647_v24 = vld [vmem:[#allocation7_spill] sm:$0xff] }
 0x12a   :  { %595 = vmatpush1.msra.mxu0 %v2342_v26  ;;  %666 = vmatpush1.msra.mxu1 %v2408_v37  ;;  %v3648_v26 = vld [vmem:[#allocation15_spill] sm:$0xff] }
 0x12b   :  { %596 = vmatprep.subr.mxu0 %v2354_v28  ;;  %667 = vmatprep.subr.mxu1 %v2420_v39  ;;  %v3649_v28 = vld [vmem:[#allocation8_spill] sm:$0xff] }
 0x12c   :  { %597 = vmatpush1.msra.mxu0 %v2366_v30  ;;  %668 = vmatpush1.msra.mxu1 %v2432_v41  ;;  %v3650_v30 = vld [vmem:[#allocation17_spill] sm:$0xff] }
 0x12d   :  { %598 = vmatprep.subr.mxu0 %v2378_v32  ;;  %669 = vmatprep.subr.mxu1 %v2444_v43  ;;  %v3651_v32 = vld [vmem:[#allocation9_spill] sm:$0xff] }
 0x12e   :  { %599 = vmatpush1.msra.mxu0 %v2390_v34  ;;  %670 = vmatpush1.msra.mxu1 %v2456_v45  ;;  %v3652_v34 = vld [vmem:[#allocation18_spill] sm:$0xff] }
 0x12f   :  { %600 = vmatprep.subr.mxu0 %v2402_v36  ;;  %671 = vmatprep.subr.mxu1 %v2468_v47  ;;  %v3653_v36 = vld [vmem:[#allocation10_spill] sm:$0xff] }
 0x130   :  { %601 = vmatpush1.msra.mxu0 %v2414_v38  ;;  %672 = vmatpush1.msra.mxu1 %v2480_v49  ;;  %v3654_v38 = vld [vmem:[#allocation19_spill] sm:$0xff] }
 0x131   :  { %602 = vmatprep.subr.mxu0 %v2426_v40  ;;  %673 = vmatprep.subr.mxu1 %v2492_v51  ;;  %v3655_v40 = vld [vmem:[#allocation12_spill] sm:$0xff] }
 0x132   :  { %603 = vmatpush1.msra.mxu0 %v2438_v42  ;;  %674 = vmatpush1.msra.mxu1 %v3644_v17  ;;  %v3656_v42 = vld [vmem:[#allocation20_spill] sm:$0xff] }
 0x133   :  { %604 = vmatprep.subr.mxu0 %v3645_v20  ;;  %675 = vmatprep.subr.mxu1 %v3646_v22 }
 0x134   :  { %605 = vmatpush1.msra.mxu0 %v3647_v24  ;;  %676 = vmatpush1.msra.mxu1 %v3648_v26  ;;  %v1988_v24 = vld [vmem:[%s3551_s0 + $0x30] sm:$0xff] }
 0x135   :  { %606 = vmatprep.subr.mxu0 %v3649_v28  ;;  %677 = vmatprep.subr.mxu1 %v3650_v30 }
 0x136   :  { %607 = vmatpush1.msra.mxu0 %v3651_v32  ;;  %678 = vmatpush1.msra.mxu1 %v3652_v34 }
 0x137   :  { %608 = vmatprep.subr.mxu0 %v3653_v36  ;;  %679 = vmatprep.subr.mxu1 %v3654_v38 }
 0x138   :  { %609 = vmatpush1.msra.mxu0 %v3655_v40  ;;  %680 = vmatpush1.msra.mxu1 %v3656_v42 }
 0x139   :  { %610 = vmatprep.subr.mxu0 %v3657_v44  ;;  %681 = vmatprep.subr.mxu1 %v3658_v46 }
 0x13a   :  { %611 = vmatpush1.msra.mxu0 %v3659_v55  ;;  %644 = vmatprep.mubr.f32.mxu0 %v3660_v57 }
 0x13b   :  { %682 = vmatpush1.msra.mxu1 %v3661_v58  ;;  %715 = vmatprep.mubr.f32.mxu1 %v3660_v57 }
 0x13c   :  { %825 = vmatprep.subr.mxu0 %v3662_v59  ;;  %896 = vmatprep.subr.mxu1 %v3663_v61 }
 0x1db   :  { %v401_v56 = vpop.f32.mrf.mxu0  ;;  %v472_v60 = vpop.f32.mrf.mxu1 }
 0x1dc   :  { %v477_v3 = vadd.f32 %v1986_v54, %v401_v56  ;;  %v479_v36 = vadd.f32 %v1988_v24, %v472_v60 }
 0x1dd   :  { %v403_v48 = vpop.f32.mrf.mxu0  ;;  %v474_v50 = vpop.f32.mrf.mxu1 }
 0x1de   :  { %v1990_v52 = vmul.f32 -1.442695, %v477_v3  ;;  %v478_v63 = vadd.f32 %v1987_v62, %v403_v48  ;;  %v480_v20 = vadd.f32 %v1989_v9, %v474_v50 }
 0x1e0   :  { %2059 = vpow2.f32 %v1990_v52  ;;  %v1991_v0 = vmul.f32 -1.442695, %v478_v63  ;;  %v1992_v28 = vmul.f32 -1.442695, %v480_v20 }
 0x1e2   :  { %2061 = vpow2.f32 %v1991_v0 }
 0x1e3   :  { %2063 = vpow2.f32 %v1992_v28 }
 0x1ed   :  { %v2060_v32 = vpop.eup %2059 }
 0x1ee   :  { %v484_v40 = vadd.f32 1.0, %v2060_v32 }
 0x1ef   :  { %v2062_v44 = vpop.eup %2061 }
 0x1f0   :  { %2065 = vrcp.f32 %v484_v40  ;;  %v490_v55 = vadd.f32 1.0, %v2062_v44  ;;  %v2064_v59 = vpop.eup %2063 }
 0x1f1   :  { %2067 = vtanh.f32 %v479_v36  ;;  %v497_v62 = vadd.f32 1.0, %v2064_v59  ;;  %v2950_v59 = vld [vmem:[%s3549_s2 + $0x1f8] sm:$0xff] }
 0x1f2   :  { %2069 = vrcp.f32 %v490_v55  ;;  %v2945_v55 = vld [vmem:[%s3549_s2 + $0x1e8] sm:$0xff]  ;;  %3673 = vst [vmem:[#allocation10_spill] sm:$0xff] %v2950_v59 }
 0x1f3   :  { %2071 = vrcp.f32 %v497_v62  ;;  %3672 = vst [vmem:[#allocation18_spill] sm:$0xff] %v2945_v55  ;;  %v2974_v62 = vld [vmem:[%s3549_s2 + $0x1d8] sm:$0xff] }
 0x1fd   :  { %v2066_v61 = vpop.eup %2065 }
 0x1fe   :  { %v2068_v54 = vpop.eup %2067 }
 0x1ff   :  { %v2070_v56 = vpop.eup %2069  ;;  %v501_v3 = vmul.f32 %v2068_v54, %v2066_v61  ;;  %v2957_v61 = vld [vmem:[%s3549_s2 + $0x1e0] sm:$0xff]  ;;  %v2962_v54 = vld [vmem:[%s3549_s2 + $0x1f0] sm:$0xff] }
 0x200   :  { %v500_v48 = vmul.f32 %v2070_v56, %v2661_v53  ;;  %v2072_v63 = vpop.eup %2071  ;;  %v2969_v56 = vld [vmem:[%s3549_s2 + $0x1c8] sm:$0xff] }
 0x202   :  { %v2746_v52 = vadd.f32 %v501_v3, %v500_v48  ;;  %v2981_v3 = vld [vmem:[%s3549_s2 + $0x1c0] sm:$0xff]  ;;  %v2986_v48 = vld [vmem:[%s3549_s2 + $0x1d0] sm:$0xff] }
 0x204   :  { %2073 = vtanh.f32 %v2746_v52 }
 0x211   :  { %v2074_v60 = vpop.eup %2073 }
 0x212   :  { %v504_v0 = vmul.f32 %v2074_v60, %v2072_v63  ;;  %v2998_v63 = vld [vmem:[%s3549_s2 + $0x1b8] sm:$0xff]  ;;  %v3005_v60 = vld [vmem:[%s3549_s2 + $0x1a0] sm:$0xff] }
 0x214   :  { %1993 = vst [vmem:[%s3552_s3 + $0x8] sm:$0xff] %v504_v0  ;;  %645 = vmatmul.mubr.f32.vlgmr.msra.gmra.mxu0 %v504_v0  ;;  %716 = vmatmul.mubr.f32.vlgmr.msra.gmra.mxu1 %v504_v0  ;;  %v3010_v0 = vld [vmem:[%s3549_s2 + $0x1b0] sm:$0xff] }
 0x215   :  { %826 = vmatpush1.msra.mxu0 %v2200_v1  ;;  %897 = vmatpush1.msra.mxu1 %v2254_v11  ;;  %v2798_v1 = vld [vmem:[%s3549_s2 + $0x140] sm:$0xff] }
 0x216   :  { %827 = vmatprep.subr.mxu0 %v2205_v2  ;;  %898 = vmatprep.subr.mxu1 %v2266_v13  ;;  %v2804_v2 = vld [vmem:[%s3549_s2 + $0x128] sm:$0xff]  ;;  %v2844_v11 = vld [vmem:[%s3549_s2 + $0xc0] sm:$0xff] }
 0x217   :  { %828 = vmatpush1.msra.mxu0 %v2213_v4  ;;  %899 = vmatpush1.msra.mxu1 %v2271_v14  ;;  %v2810_v4 = vld [vmem:[%s3549_s2 + $0x120] sm:$0xff]  ;;  %v2862_v14 = vld [vmem:[%s3549_s2 + $0x88] sm:$0xff] }
 0x218   :  { %829 = vmatprep.subr.mxu0 %v2219_v5  ;;  %900 = vmatprep.subr.mxu1 %v2283_v16  ;;  %v2816_v5 = vld [vmem:[%s3549_s2 + $0x108] sm:$0xff]  ;;  %v2856_v13 = vld [vmem:[%s3549_s2 + $0xa0] sm:$0xff] }
 0x219   :  { %830 = vmatpush1.msra.mxu0 %v2225_v6  ;;  %901 = vmatpush1.msra.mxu1 %v2295_v18  ;;  %v2821_v6 = vld [vmem:[%s3549_s2 + $0x100] sm:$0xff]  ;;  %v2874_v16 = vld [vmem:[%s3549_s2 + $0x68] sm:$0xff] }
 0x21a   :  { %831 = vmatprep.subr.mxu0 %v2231_v7  ;;  %902 = vmatprep.subr.mxu1 %v2300_v19  ;;  %v2826_v7 = vld [vmem:[%s3549_s2 + $0xe8] sm:$0xff]  ;;  %3664 = vst [vmem:[#allocation11_spill] sm:$0xff] %v2874_v16  ;;  %v2880_v18 = vld [vmem:[%s3549_s2 + $0x60] sm:$0xff] }
 0x21b   :  { %832 = vmatpush1.msra.mxu0 %v2237_v8  ;;  %903 = vmatpush1.msra.mxu1 %v2312_v21  ;;  %v2832_v8 = vld [vmem:[%s3549_s2 + $0xe0] sm:$0xff]  ;;  %3665 = vst [vmem:[#allocation6_spill] sm:$0xff] %v2880_v18  ;;  %v2886_v19 = vld [vmem:[%s3549_s2 + $0x48] sm:$0xff] }
 0x21c   :  { %833 = vmatprep.subr.mxu0 %v2248_v10  ;;  %904 = vmatprep.subr.mxu1 %v2324_v23  ;;  %v2838_v10 = vld [vmem:[%s3549_s2 + $0xc8] sm:$0xff]  ;;  %3666 = vst [vmem:[#allocation13_spill] sm:$0xff] %v2886_v19  ;;  %v2892_v21 = vld [vmem:[%s3549_s2 + $0x40] sm:$0xff] }
 0x21d   :  { %834 = vmatpush1.msra.mxu0 %v2260_v12  ;;  %905 = vmatpush1.msra.mxu1 %v2336_v25  ;;  %v2850_v12 = vld [vmem:[%s3549_s2 + $0xa8] sm:$0xff]  ;;  %3667 = vst [vmem:[#allocation7_spill] sm:$0xff] %v2892_v21  ;;  %v2904_v25 = vld [vmem:[%s3549_s2 + $0x20] sm:$0xff] }
 0x21e   :  { %835 = vmatprep.subr.mxu0 %v2277_v15  ;;  %906 = vmatprep.subr.mxu1 %v2348_v27  ;;  %v2868_v15 = vld [vmem:[%s3549_s2 + $0x80] sm:$0xff]  ;;  %v2898_v23 = vld [vmem:[%s3549_s2 + $0x28] sm:$0xff]  ;;  %3669 = vst [vmem:[#allocation8_spill] sm:$0xff] %v2904_v25 }
 0x21f   :  { %907 = vmatpush1.msra.mxu1 %v2360_v29  ;;  %889 = vmatprep.mubr.f32.mxu0 %v3660_v57  ;;  %3668 = vst [vmem:[#allocation15_spill] sm:$0xff] %v2898_v23  ;;  %v2910_v27 = vld [vmem:[%s3549_s2 + $0x8] sm:$0xff]  ;;  %v2916_v29 = vld [vmem:[%s3549_s2] sm:$0xff] }
 0x220   :  { %908 = vmatprep.subr.mxu1 %v2372_v31  ;;  %960 = vmatprep.mubr.f32.mxu1 %v3660_v57  ;;  %3670 = vst [vmem:[#allocation17_spill] sm:$0xff] %v2910_v27  ;;  %3671 = vst [vmem:[#allocation9_spill] sm:$0xff] %v2916_v29  ;;  %v1994_v31 = vld [vmem:[%s3551_s0 + $0x40] sm:$0xff] }
 0x221   :  { %909 = vmatpush1.msra.mxu1 %v2384_v33  ;;  %836 = vmatpush1.msra.mxu0 %v2798_v1 }
 0x222   :  { %910 = vmatprep.subr.mxu1 %v2396_v35  ;;  %837 = vmatprep.subr.mxu0 %v2804_v2  ;;  %v1995_v35 = vld [vmem:[%s3551_s0 + $0x48] sm:$0xff] }
 0x223   :  { %911 = vmatpush1.msra.mxu1 %v2408_v37  ;;  %838 = vmatpush1.msra.mxu0 %v2810_v4 }
 0x224   :  { %912 = vmatprep.subr.mxu1 %v2420_v39  ;;  %839 = vmatprep.subr.mxu0 %v2816_v5 }
 0x225   :  { %913 = vmatpush1.msra.mxu1 %v2432_v41  ;;  %840 = vmatpush1.msra.mxu0 %v2821_v6 }
 0x226   :  { %914 = vmatprep.subr.mxu1 %v2444_v43  ;;  %841 = vmatprep.subr.mxu0 %v2826_v7 }
 0x227   :  { %915 = vmatpush1.msra.mxu1 %v2456_v45  ;;  %842 = vmatpush1.msra.mxu0 %v2832_v8 }
 0x228   :  { %916 = vmatprep.subr.mxu1 %v2468_v47  ;;  %843 = vmatprep.subr.mxu0 %v2838_v10 }
 0x229   :  { %917 = vmatpush1.msra.mxu1 %v2480_v49  ;;  %844 = vmatpush1.msra.mxu0 %v2844_v11  ;;  %v1997_v49 = vld [vmem:[%s3551_s0 + $0x58] sm:$0xff] }
 0x22a   :  { %918 = vmatprep.subr.mxu1 %v2492_v51  ;;  %845 = vmatprep.subr.mxu0 %v2850_v12 }
 0x22b   :  { %919 = vmatpush1.msra.mxu1 %v3644_v17  ;;  %846 = vmatpush1.msra.mxu0 %v2856_v13  ;;  %v1996_v17 = vld [vmem:[%s3551_s0 + $0x50] sm:$0xff] }
 0x22c   :  { %920 = vmatprep.subr.mxu1 %v3646_v22  ;;  %847 = vmatprep.subr.mxu0 %v2862_v14 }
 0x22d   :  { %921 = vmatpush1.msra.mxu1 %v3648_v26  ;;  %848 = vmatpush1.msra.mxu0 %v2868_v15 }
 0x22e   :  { %922 = vmatprep.subr.mxu1 %v3650_v30  ;;  %849 = vmatprep.subr.mxu0 %v2874_v16 }
 0x22f   :  { %923 = vmatpush1.msra.mxu1 %v3652_v34  ;;  %850 = vmatpush1.msra.mxu0 %v2880_v18 }
 0x230   :  { %924 = vmatprep.subr.mxu1 %v3654_v38  ;;  %851 = vmatprep.subr.mxu0 %v2886_v19 }
 0x231   :  { %925 = vmatpush1.msra.mxu1 %v3656_v42  ;;  %852 = vmatpush1.msra.mxu0 %v2892_v21 }
 0x232   :  { %926 = vmatprep.subr.mxu1 %v3658_v46  ;;  %853 = vmatprep.subr.mxu0 %v2898_v23 }
 0x233   :  { %927 = vmatpush1.msra.mxu1 %v3661_v58  ;;  %854 = vmatpush1.msra.mxu0 %v2904_v25 }
 0x234   :  { %855 = vmatprep.subr.mxu0 %v2910_v27  ;;  %1141 = vmatprep.subr.mxu1 %v2950_v59 }
 0x235   :  { %856 = vmatpush1.msra.mxu0 %v2916_v29 }
 0x236   :  { %1070 = vmatprep.subr.mxu0 %v2945_v55 }
 0x2d4   :  { %v646_v33 = vpop.f32.mrf.mxu0  ;;  %v717_v45 = vpop.f32.mrf.mxu1 }
 0x2d5   :  { %v722_v37 = vadd.f32 %v1994_v31, %v646_v33  ;;  %v724_v30 = vadd.f32 %v1996_v17, %v717_v45  ;;  %v3017_v31 = vld [vmem:[%s3549_s2 + $0x188] sm:$0xff]  ;;  %v3022_v33 = vld [vmem:[%s3549_s2 + $0x198] sm:$0xff]  ;;  %v3058_v45 = vld [vmem:[%s3549_s2 + $0x170] sm:$0xff] }
 0x2d6   :  { %v648_v39 = vpop.f32.mrf.mxu0  ;;  %v719_v51 = vpop.f32.mrf.mxu1  ;;  %v3091_v17 = vld [vmem:[%s3549_s2 + $0x130] sm:$0xff] }
 0x2d7   :  { %v1998_v41 = vmul.f32 -1.442695, %v722_v37  ;;  %v723_v43 = vadd.f32 %v1995_v35, %v648_v39  ;;  %v725_v53 = vadd.f32 %v1997_v49, %v719_v51  ;;  %v3029_v35 = vld [vmem:[%s3549_s2 + $0x180] sm:$0xff]  ;;  %v3034_v37 = vld [vmem:[%s3549_s2 + $0x190] sm:$0xff]  ;;  %v3041_v39 = vld [vmem:[%s3549_s2 + $0x168] sm:$0xff] }
 0x2d8   :  { %v3070_v49 = vld [vmem:[%s3549_s2 + $0x158] sm:$0xff]  ;;  %v3077_v51 = vld [vmem:[%s3549_s2 + $0x150] sm:$0xff] }
 0x2d9   :  { %2075 = vpow2.f32 %v1998_v41  ;;  %v1999_v47 = vmul.f32 -1.442695, %v723_v43  ;;  %v2000_v22 = vmul.f32 -1.442695, %v725_v53  ;;  %v3046_v41 = vld [vmem:[%s3549_s2 + $0x178] sm:$0xff]  ;;  %v3053_v43 = vld [vmem:[%s3549_s2 + $0x160] sm:$0xff] }
 0x2da   :  { %v3084_v53 = vld [vmem:[%s3549_s2 + $0x138] sm:$0xff] }
 0x2db   :  { %2077 = vpow2.f32 %v1999_v47  ;;  %v3065_v47 = vld [vmem:[%s3549_s2 + $0x148] sm:$0xff] }
 0x2dc   :  { %2079 = vpow2.f32 %v2000_v22  ;;  %v3098_v22 = vld [vmem:[%s3549_s2 + $0x118] sm:$0xff] }
 0x2e6   :  { %v2076_v26 = vpop.eup %2075 }
 0x2e7   :  { %v729_v34 = vadd.f32 1.0, %v2076_v26  ;;  %v3103_v26 = vld [vmem:[%s3549_s2 + $0x110] sm:$0xff] }
 0x2e8   :  { %v2078_v38 = vpop.eup %2077 }
 0x2e9   :  { %2081 = vrcp.f32 %v729_v34  ;;  %v735_v42 = vadd.f32 1.0, %v2078_v38  ;;  %v2080_v46 = vpop.eup %2079  ;;  %v3115_v34 = vld [vmem:[%s3549_s2 + $0xf0] sm:$0xff]  ;;  %v3122_v38 = vld [vmem:[%s3549_s2 + $0xd8] sm:$0xff] }
 0x2ea   :  { %2083 = vtanh.f32 %v724_v30  ;;  %v742_v20 = vadd.f32 1.0, %v2080_v46  ;;  %v3108_v30 = vld [vmem:[%s3549_s2 + $0xf8] sm:$0xff] }
 0x2eb   :  { %2085 = vrcp.f32 %v735_v42  ;;  %v3129_v42 = vld [vmem:[%s3549_s2 + $0xd0] sm:$0xff]  ;;  %v3136_v46 = vld [vmem:[%s3549_s2 + $0xb8] sm:$0xff] }
 0x2ec   :  { %2087 = vrcp.f32 %v742_v20  ;;  %v3164_v20 = vld [vmem:[%s3549_s2 + $0x78] sm:$0xff] }
 0x2ed   :  { %3674 = vst [vmem:[#allocation19_spill] sm:$0xff] %v3164_v20 }
 0x2f6   :  { %v2082_v58 = vpop.eup %2081 }
 0x2f7   :  { %v2084_v9 = vpop.eup %2083 }
 0x2f8   :  { %v2086_v50 = vpop.eup %2085  ;;  %v746_v24 = vmul.f32 %v2084_v9, %v2082_v58  ;;  %v3143_v58 = vld [vmem:[%s3549_s2 + $0xb0] sm:$0xff]  ;;  %v3150_v9 = vld [vmem:[%s3549_s2 + $0x98] sm:$0xff] }
 0x2f9   :  { %v745_v28 = vmul.f32 %v2086_v50, %v2746_v52  ;;  %v2088_v36 = vpop.eup %2087  ;;  %v2993_v52 = vld [vmem:[%s3549_s2 + $0x1a8] sm:$0xff]  ;;  %v3157_v50 = vld [vmem:[%s3549_s2 + $0x90] sm:$0xff] }
 0x2fb   :  { %v2934_v32 = vadd.f32 %v746_v24, %v745_v28  ;;  %v3171_v24 = vld [vmem:[%s3549_s2 + $0x70] sm:$0xff]  ;;  %v3178_v28 = vld [vmem:[%s3549_s2 + $0x58] sm:$0xff] }
 0x2fc   :  { %3675 = vst [vmem:[#allocation12_spill] sm:$0xff] %v3171_v24  ;;  %3676 = vst [vmem:[#allocation20_spill] sm:$0xff] %v3178_v28 }
 0x2fd   :  { %2089 = vtanh.f32 %v2934_v32 }
 0x30a   :  { %v2090_v40 = vpop.eup %2089 }
 0x30b   :  { %v749_v44 = vmul.f32 %v2090_v40, %v2088_v36  ;;  %v3185_v36 = vld [vmem:[%s3549_s2 + $0x50] sm:$0xff]  ;;  %v3192_v40 = vld [vmem:[%s3549_s2 + $0x38] sm:$0xff] }
 0x30c   :  { %3677 = vst [vmem:[#allocation14_spill] sm:$0xff] %v3185_v36  ;;  %3678 = vst [vmem:[#allocation21_spill] sm:$0xff] %v3192_v40 }
 0x30d   :  { %2001 = vst [vmem:[%s3552_s3 + $0x10] sm:$0xff] %v749_v44  ;;  %890 = vmatmul.mubr.f32.vlgmr.msra.gmra.mxu0 %v749_v44  ;;  %961 = vmatmul.mubr.f32.vlgmr.msra.gmra.mxu1 %v749_v44  ;;  %v3199_v44 = vld [vmem:[%s3549_s2 + $0x30] sm:$0xff] }
 0x30e   :  { %1134 = vmatprep.mubr.f32.mxu0 %v3660_v57  ;;  %1205 = vmatprep.mubr.f32.mxu1 %v3660_v57  ;;  %3679 = vst [vmem:[#allocation16_spill] sm:$0xff] %v3199_v44  ;;  %v3206_v57 = vld [vmem:[%s3549_s2 + $0x18] sm:$0xff] }
 0x30f   :  { %1071 = vmatpush1.msra.mxu0 %v2957_v61  ;;  %1142 = vmatpush1.msra.mxu1 %v2962_v54  ;;  %3680 = vst [vmem:[#allocation22_spill] sm:$0xff] %v3206_v57 }
 0x310   :  { %1072 = vmatprep.subr.mxu0 %v2969_v56  ;;  %1143 = vmatprep.subr.mxu1 %v2974_v62 }
 0x311   :  { %1073 = vmatpush1.msra.mxu0 %v2981_v3  ;;  %1144 = vmatpush1.msra.mxu1 %v2986_v48 }
 0x312   :  { %1074 = vmatprep.subr.mxu0 %v2993_v52  ;;  %1145 = vmatprep.subr.mxu1 %v2998_v63 }
 0x313   :  { %1075 = vmatpush1.msra.mxu0 %v3005_v60  ;;  %1146 = vmatpush1.msra.mxu1 %v3010_v0 }
 0x314   :  { %1076 = vmatprep.subr.mxu0 %v3017_v31  ;;  %1147 = vmatprep.subr.mxu1 %v3022_v33 }
 0x315   :  { %1077 = vmatpush1.msra.mxu0 %v3029_v35  ;;  %1148 = vmatpush1.msra.mxu1 %v3034_v37 }
 0x316   :  { %1078 = vmatprep.subr.mxu0 %v3041_v39  ;;  %1149 = vmatprep.subr.mxu1 %v3046_v41 }
 0x317   :  { %1079 = vmatpush1.msra.mxu0 %v3053_v43  ;;  %1150 = vmatpush1.msra.mxu1 %v3058_v45 }
 0x318   :  { %1080 = vmatprep.subr.mxu0 %v3065_v47  ;;  %1151 = vmatprep.subr.mxu1 %v3070_v49 }
 0x319   :  { %1081 = vmatpush1.msra.mxu0 %v2798_v1  ;;  %1152 = vmatpush1.msra.mxu1 %v3077_v51 }
 0x31a   :  { %1082 = vmatprep.subr.mxu0 %v2804_v2  ;;  %1153 = vmatprep.subr.mxu1 %v3084_v53 }
 0x31b   :  { %1083 = vmatpush1.msra.mxu0 %v2810_v4  ;;  %1154 = vmatpush1.msra.mxu1 %v3091_v17 }
 0x31c   :  { %1084 = vmatprep.subr.mxu0 %v2816_v5  ;;  %1155 = vmatprep.subr.mxu1 %v3098_v22 }
 0x31d   :  { %1085 = vmatpush1.msra.mxu0 %v2821_v6  ;;  %1156 = vmatpush1.msra.mxu1 %v3103_v26 }
 0x31e   :  { %1086 = vmatprep.subr.mxu0 %v2826_v7  ;;  %1157 = vmatprep.subr.mxu1 %v3108_v30 }
 0x31f   :  { %1087 = vmatpush1.msra.mxu0 %v2832_v8  ;;  %1158 = vmatpush1.msra.mxu1 %v3115_v34 }
 0x320   :  { %1088 = vmatprep.subr.mxu0 %v2838_v10  ;;  %1159 = vmatprep.subr.mxu1 %v3122_v38 }
 0x321   :  { %1089 = vmatpush1.msra.mxu0 %v2844_v11  ;;  %1160 = vmatpush1.msra.mxu1 %v3129_v42 }
 0x322   :  { %1090 = vmatprep.subr.mxu0 %v2850_v12  ;;  %1161 = vmatprep.subr.mxu1 %v3136_v46 }
 0x323   :  { %1091 = vmatpush1.msra.mxu0 %v2856_v13  ;;  %1162 = vmatpush1.msra.mxu1 %v3143_v58 }
 0x324   :  { %1092 = vmatprep.subr.mxu0 %v2862_v14  ;;  %1163 = vmatprep.subr.mxu1 %v3150_v9 }
 0x325   :  { %1093 = vmatpush1.msra.mxu0 %v2868_v15  ;;  %1164 = vmatpush1.msra.mxu1 %v3157_v50 }
 0x326   :  { %1094 = vmatprep.subr.mxu0 %v2874_v16  ;;  %1165 = vmatprep.subr.mxu1 %v3164_v20 }
 0x327   :  { %1095 = vmatpush1.msra.mxu0 %v2880_v18  ;;  %1166 = vmatpush1.msra.mxu1 %v3171_v24 }
 0x328   :  { %1096 = vmatprep.subr.mxu0 %v2886_v19  ;;  %1167 = vmatprep.subr.mxu1 %v3178_v28  ;;  %v3213_v28 = vld [vmem:[%s3549_s2 + $0x10] sm:$0xff] }
 0x329   :  { %1097 = vmatpush1.msra.mxu0 %v2892_v21  ;;  %1168 = vmatpush1.msra.mxu1 %v3185_v36  ;;  %3681 = vst [vmem:[#allocation4_spill] sm:$0xff] %v3213_v28  ;;  %v2004_v19 = vld [vmem:[%s3551_s0 + $0x70] sm:$0xff] }
 0x32a   :  { %1098 = vmatprep.subr.mxu0 %v2898_v23  ;;  %1169 = vmatprep.subr.mxu1 %v3192_v40  ;;  %v2002_v40 = vld [vmem:[%s3551_s0 + $0x60] sm:$0xff] }
 0x32b   :  { %1099 = vmatpush1.msra.mxu0 %v2904_v25  ;;  %1170 = vmatpush1.msra.mxu1 %v3199_v44  ;;  %v2003_v44 = vld [vmem:[%s3551_s0 + $0x68] sm:$0xff] }
 0x32c   :  { %1100 = vmatprep.subr.mxu0 %v2910_v27  ;;  %1171 = vmatprep.subr.mxu1 %v3206_v57 }
 0x32d   :  { %1101 = vmatpush1.msra.mxu0 %v2916_v29  ;;  %1172 = vmatpush1.msra.mxu1 %v3213_v28 }
 0x32e   :  { %1315 = vmatprep.subr.mxu0 %v2945_v55  ;;  %1386 = vmatprep.subr.mxu1 %v2950_v59  ;;  %v2005_v59 = vld [vmem:[%s3551_s0 + $0x78] sm:$0xff] }
 0x3cd   :  { %v891_v23 = vpop.f32.mrf.mxu0  ;;  %v962_v29 = vpop.f32.mrf.mxu1 }
 0x3ce   :  { %v967_v27 = vadd.f32 %v2002_v40, %v891_v23  ;;  %v969_v23 = vadd.f32 %v2004_v19, %v962_v29  ;;  %v3682_v29 = vld [vmem:[#allocation11_spill] sm:$0xff] }
 0x3cf   :  { %v893_v25 = vpop.f32.mrf.mxu0  ;;  %v964_v55 = vpop.f32.mrf.mxu1 }
 0x3d0   :  { %v2006_v57 = vmul.f32 -1.442695, %v967_v27  ;;  %v968_v36 = vadd.f32 %v2003_v44, %v893_v25  ;;  %v970_v21 = vadd.f32 %v2005_v59, %v964_v55 }
 0x3d2   :  { %2091 = vpow2.f32 %v2006_v57  ;;  %v2007_v28 = vmul.f32 -1.442695, %v968_v36  ;;  %v2008_v24 = vmul.f32 -1.442695, %v970_v21 }
 0x3d4   :  { %2093 = vpow2.f32 %v2007_v28 }
 0x3d5   :  { %2095 = vpow2.f32 %v2008_v24  ;;  %v3685_v24 = vld [vmem:[#allocation12_spill] sm:$0xff] }
 0x3df   :  { %v2092_v18 = vpop.eup %2091 }
 0x3e0   :  { %v974_v40 = vadd.f32 1.0, %v2092_v18 }
 0x3e1   :  { %v2094_v27 = vpop.eup %2093 }
 0x3e2   :  { %2097 = vrcp.f32 %v974_v40  ;;  %v980_v57 = vadd.f32 1.0, %v2094_v27  ;;  %v2096_v25 = vpop.eup %2095  ;;  %v3687_v40 = vld [vmem:[#allocation20_spill] sm:$0xff]  ;;  %v3688_v27 = vld [vmem:[#allocation7_spill] sm:$0xff] }
 0x3e3   :  { %2099 = vtanh.f32 %v969_v23  ;;  %v987_v20 = vadd.f32 1.0, %v2096_v25  ;;  %v3686_v23 = vld [vmem:[#allocation13_spill] sm:$0xff]  ;;  %v3690_v25 = vld [vmem:[#allocation15_spill] sm:$0xff] }
 0x3e4   :  { %2101 = vrcp.f32 %v980_v57  ;;  %v3689_v57 = vld [vmem:[#allocation14_spill] sm:$0xff] }
 0x3e5   :  { %2103 = vrcp.f32 %v987_v20  ;;  %v3684_v20 = vld [vmem:[#allocation6_spill] sm:$0xff] }
 0x3ef   :  { %v2098_v28 = vpop.eup %2097 }
 0x3f0   :  { %v2100_v36 = vpop.eup %2099 }
 0x3f1   :  { %v2102_v44 = vpop.eup %2101  ;;  %v991_v55 = vmul.f32 %v2100_v36, %v2098_v28  ;;  %v3691_v28 = vld [vmem:[#allocation21_spill] sm:$0xff]  ;;  %v3692_v36 = vld [vmem:[#allocation8_spill] sm:$0xff] }
 0x3f2   :  { %v990_v59 = vmul.f32 %v2102_v44, %v2934_v32  ;;  %v2104_v18 = vpop.eup %2103  ;;  %v3683_v32 = vld [vmem:[#allocation19_spill] sm:$0xff]  ;;  %v3693_v44 = vld [vmem:[#allocation16_spill] sm:$0xff] }
 0x3f4   :  { %v3236_v16 = vadd.f32 %v991_v55, %v990_v59  ;;  %v3694_v55 = vld [vmem:[#allocation17_spill] sm:$0xff]  ;;  %v3695_v59 = vld [vmem:[#allocation22_spill] sm:$0xff] }
 0x3f6   :  { %2105 = vtanh.f32 %v3236_v16 }
 0x403   :  { %v2106_v19 = vpop.eup %2105 }
 0x404   :  { %v994_v21 = vmul.f32 %v2106_v19, %v2104_v18  ;;  %v3696_v18 = vld [vmem:[#allocation9_spill] sm:$0xff]  ;;  %v3697_v19 = vmov 0.0  }
 0x406   :  { %2009 = vst [vmem:[%s3552_s3 + $0x18] sm:$0xff] %v994_v21  ;;  %1135 = vmatmul.mubr.f32.vlgmr.msra.gmra.mxu0 %v994_v21  ;;  %1206 = vmatmul.mubr.f32.vlgmr.msra.gmra.mxu1 %v994_v21  ;;  %v3698_v21 = vld [vmem:[#allocation4_spill] sm:$0xff] }
 0x407   :  { %1316 = vmatpush1.msra.mxu0 %v2957_v61  ;;  %1387 = vmatpush1.msra.mxu1 %v2962_v54 }
 0x408   :  { %1317 = vmatprep.subr.mxu0 %v2969_v56  ;;  %1388 = vmatprep.subr.mxu1 %v2974_v62 }
 0x409   :  { %1318 = vmatpush1.msra.mxu0 %v2981_v3  ;;  %1389 = vmatpush1.msra.mxu1 %v2986_v48 }
 0x40a   :  { %1319 = vmatprep.subr.mxu0 %v2993_v52  ;;  %1390 = vmatprep.subr.mxu1 %v2998_v63 }
 0x40b   :  { %1320 = vmatpush1.msra.mxu0 %v3005_v60  ;;  %1391 = vmatpush1.msra.mxu1 %v3010_v0 }
 0x40c   :  { %1321 = vmatprep.subr.mxu0 %v3017_v31  ;;  %1392 = vmatprep.subr.mxu1 %v3022_v33 }
 0x40d   :  { %1322 = vmatpush1.msra.mxu0 %v3029_v35  ;;  %1393 = vmatpush1.msra.mxu1 %v3034_v37 }
 0x40e   :  { %1323 = vmatprep.subr.mxu0 %v3041_v39  ;;  %1394 = vmatprep.subr.mxu1 %v3046_v41 }
 0x40f   :  { %1324 = vmatpush1.msra.mxu0 %v3053_v43  ;;  %1395 = vmatpush1.msra.mxu1 %v3058_v45 }
 0x410   :  { %1325 = vmatprep.subr.mxu0 %v3065_v47  ;;  %1396 = vmatprep.subr.mxu1 %v3070_v49 }
 0x411   :  { %1326 = vmatpush1.msra.mxu0 %v2798_v1  ;;  %1397 = vmatpush1.msra.mxu1 %v3077_v51 }
 0x412   :  { %1327 = vmatprep.subr.mxu0 %v2804_v2  ;;  %1398 = vmatprep.subr.mxu1 %v3084_v53 }
 0x413   :  { %1328 = vmatpush1.msra.mxu0 %v2810_v4  ;;  %1399 = vmatpush1.msra.mxu1 %v3091_v17 }
 0x414   :  { %1329 = vmatprep.subr.mxu0 %v2816_v5  ;;  %1400 = vmatprep.subr.mxu1 %v3098_v22 }
 0x415   :  { %1330 = vmatpush1.msra.mxu0 %v2821_v6  ;;  %1401 = vmatpush1.msra.mxu1 %v3103_v26 }
 0x416   :  { %1331 = vmatprep.subr.mxu0 %v2826_v7  ;;  %1402 = vmatprep.subr.mxu1 %v3108_v30 }
 0x417   :  { %1332 = vmatpush1.msra.mxu0 %v2832_v8  ;;  %1403 = vmatpush1.msra.mxu1 %v3115_v34 }
 0x418   :  { %1333 = vmatprep.subr.mxu0 %v2838_v10  ;;  %1404 = vmatprep.subr.mxu1 %v3122_v38 }
 0x419   :  { %1334 = vmatpush1.msra.mxu0 %v2844_v11  ;;  %1405 = vmatpush1.msra.mxu1 %v3129_v42 }
 0x41a   :  { %1335 = vmatprep.subr.mxu0 %v2850_v12  ;;  %1406 = vmatprep.subr.mxu1 %v3136_v46 }
 0x41b   :  { %1336 = vmatpush1.msra.mxu0 %v2856_v13  ;;  %1407 = vmatpush1.msra.mxu1 %v3143_v58 }
 0x41c   :  { %1337 = vmatprep.subr.mxu0 %v2862_v14  ;;  %1408 = vmatprep.subr.mxu1 %v3150_v9 }
 0x41d   :  { %1338 = vmatpush1.msra.mxu0 %v2868_v15  ;;  %1409 = vmatpush1.msra.mxu1 %v3157_v50 }
 0x41e   :  { %1339 = vmatprep.subr.mxu0 %v3682_v29  ;;  %1410 = vmatprep.subr.mxu1 %v3683_v32 }
 0x41f   :  { %1340 = vmatpush1.msra.mxu0 %v3684_v20  ;;  %1411 = vmatpush1.msra.mxu1 %v3685_v24 }
 0x420   :  { %1341 = vmatprep.subr.mxu0 %v3686_v23  ;;  %1412 = vmatprep.subr.mxu1 %v3687_v40  ;;  %v2012_v23 = vld [vmem:[%s3551_s0 + $0x90] sm:$0xff] }
 0x421   :  { %1342 = vmatpush1.msra.mxu0 %v3688_v27  ;;  %1413 = vmatpush1.msra.mxu1 %v3689_v57  ;;  %v3699_v57 = vld [vmem:[#allocation18_spill] sm:$0xff] }
 0x422   :  { %1343 = vmatprep.subr.mxu0 %v3690_v25  ;;  %1414 = vmatprep.subr.mxu1 %v3691_v28  ;;  %v3700_v25 = vld [vmem:[#allocation10_spill] sm:$0xff] }
 0x423   :  { %1344 = vmatpush1.msra.mxu0 %v3692_v36  ;;  %1415 = vmatpush1.msra.mxu1 %v3693_v44  ;;  %v2010_v44 = vld [vmem:[%s3551_s0 + $0x80] sm:$0xff] }
 0x424   :  { %1345 = vmatprep.subr.mxu0 %v3694_v55  ;;  %1416 = vmatprep.subr.mxu1 %v3695_v59  ;;  %v2011_v59 = vld [vmem:[%s3551_s0 + $0x88] sm:$0xff] }
 0x425   :  { %1346 = vmatpush1.msra.mxu0 %v3696_v18  ;;  %1379 = vmatprep.mubr.f32.mxu0 %v3697_v19 }
 0x426   :  { %1417 = vmatpush1.msra.mxu1 %v3698_v21  ;;  %1450 = vmatprep.mubr.f32.mxu1 %v3697_v19 }
 0x427   :  { %1560 = vmatprep.subr.mxu0 %v3699_v57  ;;  %1631 = vmatprep.subr.mxu1 %v3700_v25  ;;  %v2013_v25 = vld [vmem:[%s3551_s0 + $0x98] sm:$0xff] }
 0x4c6   :  { %v1136_v36 = vpop.f32.mrf.mxu0  ;;  %v1207_v21 = vpop.f32.mrf.mxu1 }
 0x4c7   :  { %v1212_v18 = vadd.f32 %v2010_v44, %v1136_v36  ;;  %v1214_v36 = vadd.f32 %v2012_v23, %v1207_v21  ;;  %v3717_v21 = vld [vmem:[#allocation4_spill] sm:$0xff] }
 0x4c8   :  { %v1138_v55 = vpop.f32.mrf.mxu0  ;;  %v1209_v57 = vpop.f32.mrf.mxu1 }
 0x4c9   :  { %v2014_v28 = vmul.f32 -1.442695, %v1212_v18  ;;  %v1213_v27 = vadd.f32 %v2011_v59, %v1138_v55  ;;  %v1215_v40 = vadd.f32 %v2013_v25, %v1209_v57 }
 0x4cb   :  { %2107 = vpow2.f32 %v2014_v28  ;;  %v2015_v19 = vmul.f32 -1.442695, %v1213_v27  ;;  %v2016_v24 = vmul.f32 -1.442695, %v1215_v40  ;;  %v3716_v40 = vmov 0.0  }
 0x4cd   :  { %2109 = vpow2.f32 %v2015_v19 }
 0x4ce   :  { %2111 = vpow2.f32 %v2016_v24 }
 0x4d8   :  { %v2108_v20 = vpop.eup %2107 }
 0x4d9   :  { %v1219_v44 = vadd.f32 1.0, %v2108_v20 }
 0x4da   :  { %v2110_v18 = vpop.eup %2109 }
 0x4db   :  { %2113 = vrcp.f32 %v1219_v44  ;;  %v1225_v28 = vadd.f32 1.0, %v2110_v18  ;;  %v2112_v27 = vpop.eup %2111  ;;  %v3719_v44 = vld [vmem:[#allocation10_spill] sm:$0xff]  ;;  %v2018_v18 = vld [vmem:[%s3551_s0 + $0xa0] sm:$0xff] }
 0x4dc   :  { %2115 = vtanh.f32 %v1214_v36  ;;  %v1232_v32 = vadd.f32 1.0, %v2112_v27  ;;  %v3718_v36 = vld [vmem:[#allocation18_spill] sm:$0xff]  ;;  %v2019_v27 = vld [vmem:[%s3551_s0 + $0xa8] sm:$0xff] }
 0x4dd   :  { %2117 = vrcp.f32 %v1225_v28 }
 0x4de   :  { %2119 = vrcp.f32 %v1232_v32  ;;  %v3715_v32 = vld [vmem:[#allocation9_spill] sm:$0xff] }
 0x4e8   :  { %v2114_v55 = vpop.eup %2113 }
 0x4e9   :  { %v2116_v59 = vpop.eup %2115 }
 0x4ea   :  { %v2118_v19 = vpop.eup %2117  ;;  %v1236_v57 = vmul.f32 %v2116_v59, %v2114_v55 }
 0x4eb   :  { %v1235_v25 = vmul.f32 %v2118_v19, %v3236_v16  ;;  %v2120_v20 = vpop.eup %2119  ;;  %v3714_v16 = vld [vmem:[#allocation22_spill] sm:$0xff] }
 0x4ed   :  { %v3321_v29 = vadd.f32 %v1236_v57, %v1235_v25 }
 0x4ef   :  { %2121 = vtanh.f32 %v3321_v29 }
 0x4fc   :  { %v2122_v23 = vpop.eup %2121 }
 0x4fd   :  { %v1239_v24 = vmul.f32 %v2122_v23, %v2120_v20  ;;  %v2021_v23 = vld [vmem:[%s3551_s0 + $0xb8] sm:$0xff] }
 0x4ff   :  { %2017 = vst [vmem:[%s3552_s3 + $0x20] sm:$0xff] %v1239_v24  ;;  %1380 = vmatmul.mubr.f32.vlgmr.msra.gmra.mxu0 %v1239_v24  ;;  %1451 = vmatmul.mubr.f32.vlgmr.msra.gmra.mxu1 %v1239_v24 }
 0x500   :  { %1561 = vmatpush1.msra.mxu0 %v2957_v61  ;;  %1632 = vmatpush1.msra.mxu1 %v2962_v54 }
 0x501   :  { %1562 = vmatprep.subr.mxu0 %v2969_v56  ;;  %1633 = vmatprep.subr.mxu1 %v2974_v62 }
 0x502   :  { %1563 = vmatpush1.msra.mxu0 %v2981_v3  ;;  %1634 = vmatpush1.msra.mxu1 %v2986_v48 }
 0x503   :  { %1564 = vmatprep.subr.mxu0 %v2993_v52  ;;  %1635 = vmatprep.subr.mxu1 %v2998_v63 }
 0x504   :  { %1565 = vmatpush1.msra.mxu0 %v3005_v60  ;;  %1636 = vmatpush1.msra.mxu1 %v3010_v0 }
 0x505   :  { %1566 = vmatprep.subr.mxu0 %v3017_v31  ;;  %1637 = vmatprep.subr.mxu1 %v3022_v33 }
 0x506   :  { %1567 = vmatpush1.msra.mxu0 %v3029_v35  ;;  %1638 = vmatpush1.msra.mxu1 %v3034_v37 }
 0x507   :  { %1568 = vmatprep.subr.mxu0 %v3041_v39  ;;  %1639 = vmatprep.subr.mxu1 %v3046_v41 }
 0x508   :  { %1569 = vmatpush1.msra.mxu0 %v3053_v43  ;;  %1640 = vmatpush1.msra.mxu1 %v3058_v45 }
 0x509   :  { %1570 = vmatprep.subr.mxu0 %v3065_v47  ;;  %1641 = vmatprep.subr.mxu1 %v3070_v49 }
 0x50a   :  { %1571 = vmatpush1.msra.mxu0 %v2798_v1  ;;  %1642 = vmatpush1.msra.mxu1 %v3077_v51  ;;  %v3701_v1 = vld [vmem:[#allocation11_spill] sm:$0xff] }
 0x50b   :  { %1572 = vmatprep.subr.mxu0 %v2804_v2  ;;  %1643 = vmatprep.subr.mxu1 %v3084_v53  ;;  %v3702_v2 = vld [vmem:[#allocation19_spill] sm:$0xff] }
 0x50c   :  { %1573 = vmatpush1.msra.mxu0 %v2810_v4  ;;  %1644 = vmatpush1.msra.mxu1 %v3091_v17  ;;  %v3703_v4 = vld [vmem:[#allocation6_spill] sm:$0xff] }
 0x50d   :  { %1574 = vmatprep.subr.mxu0 %v2816_v5  ;;  %1645 = vmatprep.subr.mxu1 %v3098_v22  ;;  %v3704_v5 = vld [vmem:[#allocation12_spill] sm:$0xff] }
 0x50e   :  { %1575 = vmatpush1.msra.mxu0 %v2821_v6  ;;  %1646 = vmatpush1.msra.mxu1 %v3103_v26  ;;  %v3705_v6 = vld [vmem:[#allocation13_spill] sm:$0xff] }
 0x50f   :  { %1576 = vmatprep.subr.mxu0 %v2826_v7  ;;  %1647 = vmatprep.subr.mxu1 %v3108_v30  ;;  %v3706_v7 = vld [vmem:[#allocation20_spill] sm:$0xff] }
 0x510   :  { %1577 = vmatpush1.msra.mxu0 %v2832_v8  ;;  %1648 = vmatpush1.msra.mxu1 %v3115_v34  ;;  %v3707_v8 = vld [vmem:[#allocation7_spill] sm:$0xff] }
 0x511   :  { %1578 = vmatprep.subr.mxu0 %v2838_v10  ;;  %1649 = vmatprep.subr.mxu1 %v3122_v38  ;;  %v3708_v10 = vld [vmem:[#allocation14_spill] sm:$0xff] }
 0x512   :  { %1579 = vmatpush1.msra.mxu0 %v2844_v11  ;;  %1650 = vmatpush1.msra.mxu1 %v3129_v42  ;;  %v3709_v11 = vld [vmem:[#allocation15_spill] sm:$0xff] }
 0x513   :  { %1580 = vmatprep.subr.mxu0 %v2850_v12  ;;  %1651 = vmatprep.subr.mxu1 %v3136_v46  ;;  %v3710_v12 = vld [vmem:[#allocation21_spill] sm:$0xff] }
 0x514   :  { %1581 = vmatpush1.msra.mxu0 %v2856_v13  ;;  %1652 = vmatpush1.msra.mxu1 %v3143_v58  ;;  %v3711_v13 = vld [vmem:[#allocation8_spill] sm:$0xff] }
 0x515   :  { %1582 = vmatprep.subr.mxu0 %v2862_v14  ;;  %1653 = vmatprep.subr.mxu1 %v3150_v9  ;;  %v3712_v14 = vld [vmem:[#allocation16_spill] sm:$0xff] }
 0x516   :  { %1583 = vmatpush1.msra.mxu0 %v2868_v15  ;;  %1654 = vmatpush1.msra.mxu1 %v3157_v50  ;;  %v3713_v15 = vld [vmem:[#allocation17_spill] sm:$0xff] }
 0x517   :  { %1584 = vmatprep.subr.mxu0 %v3701_v1  ;;  %1655 = vmatprep.subr.mxu1 %v3702_v2 }
 0x518   :  { %1585 = vmatpush1.msra.mxu0 %v3703_v4  ;;  %1656 = vmatpush1.msra.mxu1 %v3704_v5  ;;  %v2020_v4 = vld [vmem:[%s3551_s0 + $0xb0] sm:$0xff] }
 0x519   :  { %1586 = vmatprep.subr.mxu0 %v3705_v6  ;;  %1657 = vmatprep.subr.mxu1 %v3706_v7 }
 0x51a   :  { %1587 = vmatpush1.msra.mxu0 %v3707_v8  ;;  %1658 = vmatpush1.msra.mxu1 %v3708_v10 }
 0x51b   :  { %1588 = vmatprep.subr.mxu0 %v3709_v11  ;;  %1659 = vmatprep.subr.mxu1 %v3710_v12 }
 0x51c   :  { %1589 = vmatpush1.msra.mxu0 %v3711_v13  ;;  %1660 = vmatpush1.msra.mxu1 %v3712_v14 }
 0x51d   :  { %1590 = vmatprep.subr.mxu0 %v3713_v15  ;;  %1661 = vmatprep.subr.mxu1 %v3714_v16 }
 0x51e   :  { %1591 = vmatpush1.msra.mxu0 %v3715_v32  ;;  %1624 = vmatprep.mubr.f32.mxu0 %v3716_v40 }
 0x51f   :  { %1662 = vmatpush1.msra.mxu1 %v3717_v21  ;;  %1695 = vmatprep.mubr.f32.mxu1 %v3716_v40 }
 0x520   :  { %1805 = vmatprep.subr.mxu0 %v3718_v36  ;;  %1876 = vmatprep.subr.mxu1 %v3719_v44 }
 0x5bf   :  { %v1381_v28 = vpop.f32.mrf.mxu0  ;;  %v1452_v25 = vpop.f32.mrf.mxu1 }
 0x5c0   :  { %v1457_v55 = vadd.f32 %v2018_v18, %v1381_v28  ;;  %v1459_v11 = vadd.f32 %v2020_v4, %v1452_v25 }
 0x5c1   :  { %v1383_v59 = vpop.f32.mrf.mxu0  ;;  %v1454_v24 = vpop.f32.mrf.mxu1 }
 0x5c2   :  { %v2022_v19 = vmul.f32 -1.442695, %v1457_v55  ;;  %v1458_v57 = vadd.f32 %v2019_v27, %v1383_v59  ;;  %v1460_v1 = vadd.f32 %v2021_v23, %v1454_v24 }
 0x5c4   :  { %2123 = vpow2.f32 %v2022_v19  ;;  %v2023_v20 = vmul.f32 -1.442695, %v1458_v57  ;;  %v2024_v6 = vmul.f32 -1.442695, %v1460_v1 }
 0x5c6   :  { %2125 = vpow2.f32 %v2023_v20 }
 0x5c7   :  { %2127 = vpow2.f32 %v2024_v6 }
 0x5d1   :  { %v2124_v8 = vpop.eup %2123 }
 0x5d2   :  { %v1464_v13 = vadd.f32 1.0, %v2124_v8 }
 0x5d3   :  { %v2126_v15 = vpop.eup %2125 }
 0x5d4   :  { %2129 = vrcp.f32 %v1464_v13  ;;  %v1470_v32 = vadd.f32 1.0, %v2126_v15  ;;  %v2128_v36 = vpop.eup %2127  ;;  %v2034_v15 = vld [vmem:[%s3551_s0 + $0xe0] sm:$0xff] }
 0x5d5   :  { %2131 = vtanh.f32 %v1459_v11  ;;  %v1477_v27 = vadd.f32 1.0, %v2128_v36  ;;  %v2035_v36 = vld [vmem:[%s3551_s0 + $0xe8] sm:$0xff] }
 0x5d6   :  { %2133 = vrcp.f32 %v1470_v32 }
 0x5d7   :  { %2135 = vrcp.f32 %v1477_v27 }
 0x5e1   :  { %v2130_v44 = vpop.eup %2129 }
 0x5e2   :  { %v2132_v18 = vpop.eup %2131 }
 0x5e3   :  { %v2134_v28 = vpop.eup %2133  ;;  %v1481_v55 = vmul.f32 %v2132_v18, %v2130_v44 }
 0x5e4   :  { %v1480_v59 = vmul.f32 %v2134_v28, %v3321_v29  ;;  %v2136_v57 = vpop.eup %2135  ;;  %v2028_v29 = vld [vmem:[%s3551_s0 + $0xd0] sm:$0xff] }
 0x5e6   :  { %v3406_v19 = vadd.f32 %v1481_v55, %v1480_v59 }
 0x5e8   :  { %2137 = vtanh.f32 %v3406_v19 }
 0x5f5   :  { %v2138_v25 = vpop.eup %2137 }
 0x5f6   :  { %v1484_v20 = vmul.f32 %v2138_v25, %v2136_v57 }
 0x5f8   :  { %2025 = vst [vmem:[%s3552_s3 + $0x28] sm:$0xff] %v1484_v20  ;;  %1625 = vmatmul.mubr.f32.vlgmr.msra.gmra.mxu0 %v1484_v20  ;;  %1696 = vmatmul.mubr.f32.vlgmr.msra.gmra.mxu1 %v1484_v20  ;;  %v2036_v20 = vld [vmem:[%s3551_s0 + $0xf0] sm:$0xff] }
 0x5f9   :  { %1806 = vmatpush1.msra.mxu0 %v2957_v61  ;;  %1877 = vmatpush1.msra.mxu1 %v2962_v54  ;;  %v1781_v61 = vld [vmem:[%s3549_s2 + $0x140] sm:$0xff]  ;;  %v1778_v54 = vld [vmem:[%s3549_s2 + $0x128] sm:$0xff] }
 0x5fa   :  { %1807 = vmatprep.subr.mxu0 %v2969_v56  ;;  %1878 = vmatprep.subr.mxu1 %v2974_v62  ;;  %v1777_v56 = vld [vmem:[%s3549_s2 + $0x120] sm:$0xff]  ;;  %v1774_v62 = vld [vmem:[%s3549_s2 + $0x108] sm:$0xff] }
 0x5fb   :  { %1808 = vmatpush1.msra.mxu0 %v2981_v3  ;;  %1879 = vmatpush1.msra.mxu1 %v2986_v48  ;;  %v1773_v3 = vld [vmem:[%s3549_s2 + $0x100] sm:$0xff]  ;;  %v1770_v48 = vld [vmem:[%s3549_s2 + $0xe8] sm:$0xff] }
 0x5fc   :  { %1809 = vmatprep.subr.mxu0 %v2993_v52  ;;  %1880 = vmatprep.subr.mxu1 %v2998_v63  ;;  %v1769_v52 = vld [vmem:[%s3549_s2 + $0xe0] sm:$0xff]  ;;  %v1766_v63 = vld [vmem:[%s3549_s2 + $0xc8] sm:$0xff] }
 0x5fd   :  { %1810 = vmatpush1.msra.mxu0 %v3005_v60  ;;  %1881 = vmatpush1.msra.mxu1 %v3010_v0  ;;  %v1765_v60 = vld [vmem:[%s3549_s2 + $0xc0] sm:$0xff]  ;;  %v1762_v0 = vld [vmem:[%s3549_s2 + $0xa8] sm:$0xff] }
 0x5fe   :  { %1811 = vmatprep.subr.mxu0 %v3017_v31  ;;  %1882 = vmatprep.subr.mxu1 %v3022_v33  ;;  %v1761_v31 = vld [vmem:[%s3549_s2 + $0xa0] sm:$0xff]  ;;  %v1758_v33 = vld [vmem:[%s3549_s2 + $0x88] sm:$0xff] }
 0x5ff   :  { %1812 = vmatpush1.msra.mxu0 %v3029_v35  ;;  %1883 = vmatpush1.msra.mxu1 %v3034_v37  ;;  %v1757_v35 = vld [vmem:[%s3549_s2 + $0x80] sm:$0xff]  ;;  %v1754_v37 = vld [vmem:[%s3549_s2 + $0x68] sm:$0xff] }
 0x600   :  { %1813 = vmatprep.subr.mxu0 %v3041_v39  ;;  %1884 = vmatprep.subr.mxu1 %v3046_v41  ;;  %v1753_v39 = vld [vmem:[%s3549_s2 + $0x60] sm:$0xff]  ;;  %v1750_v41 = vld [vmem:[%s3549_s2 + $0x48] sm:$0xff] }
 0x601   :  { %1814 = vmatpush1.msra.mxu0 %v3053_v43  ;;  %1885 = vmatpush1.msra.mxu1 %v3058_v45  ;;  %v1749_v43 = vld [vmem:[%s3549_s2 + $0x40] sm:$0xff]  ;;  %v1746_v45 = vld [vmem:[%s3549_s2 + $0x28] sm:$0xff] }
 0x602   :  { %1815 = vmatprep.subr.mxu0 %v3065_v47  ;;  %1886 = vmatprep.subr.mxu1 %v3070_v49  ;;  %v1745_v47 = vld [vmem:[%s3549_s2 + $0x20] sm:$0xff]  ;;  %v1742_v49 = vld [vmem:[%s3549_s2 + $0x8] sm:$0xff] }
 0x603   :  { %1887 = vmatpush1.msra.mxu1 %v3077_v51  ;;  %1869 = vmatprep.mubr.f32.mxu0 %v3716_v40  ;;  %v1741_v51 = vld [vmem:[%s3549_s2] sm:$0xff] }
 0x604   :  { %1888 = vmatprep.subr.mxu1 %v3084_v53  ;;  %1940 = vmatprep.mubr.f32.mxu1 %v3716_v40  ;;  %v2026_v53 = vld [vmem:[%s3551_s0 + $0xc0] sm:$0xff] }
 0x605   :  { %1889 = vmatpush1.msra.mxu1 %v3091_v17  ;;  %1816 = vmatpush1.msra.mxu0 %v1781_v61 }
 0x606   :  { %1890 = vmatprep.subr.mxu1 %v3098_v22  ;;  %1817 = vmatprep.subr.mxu0 %v1778_v54  ;;  %v2027_v22 = vld [vmem:[%s3551_s0 + $0xc8] sm:$0xff] }
 0x607   :  { %1891 = vmatpush1.msra.mxu1 %v3103_v26  ;;  %1818 = vmatpush1.msra.mxu0 %v1777_v56 }
 0x608   :  { %1892 = vmatprep.subr.mxu1 %v3108_v30  ;;  %1819 = vmatprep.subr.mxu0 %v1774_v62 }
 0x609   :  { %1893 = vmatpush1.msra.mxu1 %v3115_v34  ;;  %1820 = vmatpush1.msra.mxu0 %v1773_v3 }
 0x60a   :  { %1894 = vmatprep.subr.mxu1 %v3122_v38  ;;  %1821 = vmatprep.subr.mxu0 %v1770_v48 }
 0x60b   :  { %1895 = vmatpush1.msra.mxu1 %v3129_v42  ;;  %1822 = vmatpush1.msra.mxu0 %v1769_v52 }
 0x60c   :  { %1896 = vmatprep.subr.mxu1 %v3136_v46  ;;  %1823 = vmatprep.subr.mxu0 %v1766_v63 }
 0x60d   :  { %1897 = vmatpush1.msra.mxu1 %v3143_v58  ;;  %1824 = vmatpush1.msra.mxu0 %v1765_v60  ;;  %v2029_v58 = vld [vmem:[%s3551_s0 + $0xd8] sm:$0xff] }
 0x60e   :  { %1898 = vmatprep.subr.mxu1 %v3150_v9  ;;  %1825 = vmatprep.subr.mxu0 %v1762_v0 }
 0x60f   :  { %1899 = vmatpush1.msra.mxu1 %v3157_v50  ;;  %1826 = vmatpush1.msra.mxu0 %v1761_v31 }
 0x610   :  { %1900 = vmatprep.subr.mxu1 %v3702_v2  ;;  %1827 = vmatprep.subr.mxu0 %v1758_v33 }
 0x611   :  { %1901 = vmatpush1.msra.mxu1 %v3704_v5  ;;  %1828 = vmatpush1.msra.mxu0 %v1757_v35 }
 0x612   :  { %1902 = vmatprep.subr.mxu1 %v3706_v7  ;;  %1829 = vmatprep.subr.mxu0 %v1754_v37 }
 0x613   :  { %1903 = vmatpush1.msra.mxu1 %v3708_v10  ;;  %1830 = vmatpush1.msra.mxu0 %v1753_v39 }
 0x614   :  { %1904 = vmatprep.subr.mxu1 %v3710_v12  ;;  %1831 = vmatprep.subr.mxu0 %v1750_v41 }
 0x615   :  { %1905 = vmatpush1.msra.mxu1 %v3712_v14  ;;  %1832 = vmatpush1.msra.mxu0 %v1749_v43 }
 0x616   :  { %1906 = vmatprep.subr.mxu1 %v3714_v16  ;;  %1833 = vmatprep.subr.mxu0 %v1746_v45 }
 0x617   :  { %1907 = vmatpush1.msra.mxu1 %v3717_v21  ;;  %1834 = vmatpush1.msra.mxu0 %v1745_v47 }
 0x618   :  { %1835 = vmatprep.subr.mxu0 %v1742_v49 }
 0x619   :  { %1836 = vmatpush1.msra.mxu0 %v1741_v51 }
 0x6b8   :  { %v1626_v17 = vpop.f32.mrf.mxu0  ;;  %v1697_v42 = vpop.f32.mrf.mxu1 }
 0x6b9   :  { %v1702_v26 = vadd.f32 %v2026_v53, %v1626_v17  ;;  %v1704_v7 = vadd.f32 %v2028_v29, %v1697_v42 }
 0x6ba   :  { %v1628_v30 = vpop.f32.mrf.mxu0  ;;  %v1699_v9 = vpop.f32.mrf.mxu1 }
 0x6bb   :  { %v2030_v34 = vmul.f32 -1.442695, %v1702_v26  ;;  %v1703_v38 = vadd.f32 %v2027_v22, %v1628_v30  ;;  %v1705_v50 = vadd.f32 %v2029_v58, %v1699_v9 }
 0x6bd   :  { %2139 = vpow2.f32 %v2030_v34  ;;  %v2031_v46 = vmul.f32 -1.442695, %v1703_v38  ;;  %v2032_v2 = vmul.f32 -1.442695, %v1705_v50 }
 0x6bf   :  { %2141 = vpow2.f32 %v2031_v46 }
 0x6c0   :  { %2143 = vpow2.f32 %v2032_v2 }
 0x6ca   :  { %v2140_v5 = vpop.eup %2139 }
 0x6cb   :  { %v1709_v10 = vadd.f32 1.0, %v2140_v5 }
 0x6cc   :  { %v2142_v12 = vpop.eup %2141 }
 0x6cd   :  { %2145 = vrcp.f32 %v1709_v10  ;;  %v1715_v14 = vadd.f32 1.0, %v2142_v12  ;;  %v2144_v16 = vpop.eup %2143 }
 0x6ce   :  { %2147 = vtanh.f32 %v1704_v7  ;;  %v1722_v24 = vadd.f32 1.0, %v2144_v16 }
 0x6cf   :  { %2149 = vrcp.f32 %v1715_v14 }
 0x6d0   :  { %2151 = vrcp.f32 %v1722_v24 }
 0x6da   :  { %v2146_v40 = vpop.eup %2145 }
 0x6db   :  { %v2148_v21 = vpop.eup %2147 }
 0x6dc   :  { %v2150_v23 = vpop.eup %2149  ;;  %v1726_v1 = vmul.f32 %v2148_v21, %v2146_v40 }
 0x6dd   :  { %v1725_v4 = vmul.f32 %v2150_v23, %v3406_v19  ;;  %v2152_v8 = vpop.eup %2151  ;;  %v2037_v19 = vld [vmem:[%s3551_s0 + $0xf8] sm:$0xff] }
 0x6df   :  { %v1727_v6 = vadd.f32 %v1726_v1, %v1725_v4 }
 0x6e1   :  { %2153 = vtanh.f32 %v1727_v6 }
 0x6ee   :  { %v2154_v11 = vpop.eup %2153 }
 0x6ef   :  { %v1729_v13 = vmul.f32 %v2154_v11, %v2152_v8 }
 0x6f1   :  { %2033 = vst [vmem:[%s3552_s3 + $0x30] sm:$0xff] %v1729_v13  ;;  %1870 = vmatmul.mubr.f32.vlgmr.msra.gmra.mxu0 %v1729_v13  ;;  %1941 = vmatmul.mubr.f32.vlgmr.msra.gmra.mxu1 %v1729_v13 }
 0x7b1   :  { %v1871_v32 = vpop.f32.mrf.mxu0  ;;  %v1942_v55 = vpop.f32.mrf.mxu1 }
 0x7b2   :  { %v1947_v44 = vadd.f32 %v2034_v15, %v1871_v32  ;;  %v1949_v56 = vadd.f32 %v2036_v20, %v1942_v55 }
 0x7b3   :  { %v1873_v18 = vpop.f32.mrf.mxu0  ;;  %v1944_v57 = vpop.f32.mrf.mxu1 }
 0x7b4   :  { %v2038_v28 = vmul.f32 -1.442695, %v1947_v44  ;;  %v1948_v27 = vadd.f32 %v2035_v36, %v1873_v18  ;;  %v1950_v25 = vadd.f32 %v2037_v19, %v1944_v57 }
 0x7b6   :  { %2155 = vpow2.f32 %v2038_v28  ;;  %v2039_v59 = vmul.f32 -1.442695, %v1948_v27  ;;  %v2040_v61 = vmul.f32 -1.442695, %v1950_v25 }
 0x7b8   :  { %2157 = vpow2.f32 %v2039_v59 }
 0x7b9   :  { %2159 = vpow2.f32 %v2040_v61 }
 0x7c3   :  { %v2156_v54 = vpop.eup %2155 }
 0x7c4   :  { %v1954_v62 = vadd.f32 1.0, %v2156_v54 }
 0x7c5   :  { %v2158_v3 = vpop.eup %2157 }
 0x7c6   :  { %2161 = vrcp.f32 %v1954_v62  ;;  %v1960_v48 = vadd.f32 1.0, %v2158_v3  ;;  %v2160_v52 = vpop.eup %2159 }
 0x7c7   :  { %2163 = vtanh.f32 %v1949_v56  ;;  %v1967_v31 = vadd.f32 1.0, %v2160_v52 }
 0x7c8   :  { %2165 = vrcp.f32 %v1960_v48 }
 0x7c9   :  { %2167 = vrcp.f32 %v1967_v31 }
 0x7d3   :  { %v2162_v63 = vpop.eup %2161 }
 0x7d4   :  { %v2164_v60 = vpop.eup %2163 }
 0x7d5   :  { %v2166_v0 = vpop.eup %2165  ;;  %v1971_v33 = vmul.f32 %v2164_v60, %v2162_v63 }
 0x7d6   :  { %v1970_v35 = vmul.f32 %v2166_v0, %v1727_v6  ;;  %v2168_v39 = vpop.eup %2167 }
 0x7d8   :  { %v1972_v37 = vadd.f32 %v1971_v33, %v1970_v35 }
 0x7da   :  { %2169 = vtanh.f32 %v1972_v37 }
 0x7e7   :  { %v2170_v41 = vpop.eup %2169 }
 0x7e8   :  { %v1974_v43 = vmul.f32 %v2170_v41, %v2168_v39 }
 0x7ea   :  { %2041 = vst [vmem:[%s3552_s3 + $0x38] sm:$0xff] %v1974_v43 }

</bundles_post_ra>
